<compile_context>
chip_gen: v7x
topology: tpu7x:2x2x1
jax: 0.10.0
libtpu: 0.0.40
codegen_flags: <defaults>
</compile_context>

<pallas_src>
import jax
import jax.numpy as jnp
from jax.experimental import pallas as pl
from jax.experimental.pallas import tpu as pltpu  # noqa: F401  (TPU backend assumed)

# ---- small synthetic config (DistilBERT-shaped, scaled down) ----
B, L, H = 2, 8, 32          # batch, seq len, hidden
N_HEADS = 4
D_HEAD = H // N_HEADS
FFN = 4 * H
N_LAYERS = 2
VOCAB = 100
MAX_POS = 16
NUM_CLASSES = 5
PAD_CLASSES = 128           # lane-dense classifier output (sliced to 5 outside)
OUT_ROWS = 8                # sublane-dense output rows (sliced to B outside)
LN_EPS = 1e-12
ATTN_SCALE = 1.0 / (float(D_HEAD) ** 0.5)   # folded into wq/bq at init
MASK_BIAS = -1e9            # additive bias applied to masked keys


# ------------------------- in-kernel helpers -------------------------
def _layernorm(x, gamma, beta):
    mu = jnp.mean(x, axis=-1, keepdims=True)
    var = jnp.mean((x - mu) ** 2, axis=-1, keepdims=True)
    return (x - mu) * jax.lax.rsqrt(var + LN_EPS) * gamma + beta


def _gelu(x):
    # TODO(synk): HF DistilBERT uses exact erf-GELU; tanh approximation used here
    # (erf lowering in Mosaic is not guaranteed).
    c = jnp.float32(0.7978845608028654)  # sqrt(2/pi)
    return 0.5 * x * (1.0 + jnp.tanh(c * (x + 0.044715 * x * x * x)))


def _to_heads(x):
    # [B*L, H] -> [B*N_HEADS, L, D_HEAD]
    # N_HEADS lane slices + layout-trivial leading-dim reshapes (L == 8 sublanes,
    # so splits land on tile boundaries); no per-(batch,head) slicing/stacking.
    heads = [x[:, h * D_HEAD:(h + 1) * D_HEAD].reshape(B, 1, L, D_HEAD)
             for h in range(N_HEADS)]
    return jnp.concatenate(heads, axis=1).reshape(B * N_HEADS, L, D_HEAD)


def _from_heads(x):
    # [B*N_HEADS, L, D_HEAD] -> [B*L, H]
    x4 = x.reshape(B, N_HEADS, L, D_HEAD)
    cols = [x4[:, h].reshape(B * L, D_HEAD) for h in range(N_HEADS)]
    return jnp.concatenate(cols, axis=-1)


def _encoder_layer(h, bias3, wq, bq, wk, bk, wv, bv, wo, bo,
                   g1, be1, w1, b1, w2, b2, g2, be2):
    # --- multi-head self-attention, all (batch x head) pairs batched ---
    hb = h.astype(jnp.bfloat16)
    q = jnp.dot(hb, wq, preferred_element_type=jnp.float32) + bq   # scale folded in
    k = jnp.dot(hb, wk, preferred_element_type=jnp.float32) + bk
    v = jnp.dot(hb, wv, preferred_element_type=jnp.float32) + bv

    qh = _to_heads(q).astype(jnp.bfloat16)        # [BH, L, D]
    kh = _to_heads(k).astype(jnp.bfloat16)
    vh = _to_heads(v).astype(jnp.bfloat16)

    scores = jnp.einsum('hld,hmd->hlm', qh, kh,
                        preferred_element_type=jnp.float32) + bias3   # [BH, L, L]
    m = jnp.max(scores, axis=-1, keepdims=True)
    e = jnp.exp(scores - m)
    probs = e * pl.reciprocal(jnp.sum(e, axis=-1, keepdims=True), approx=True)
    ctx = jnp.einsum('hlm,hmd->hld', probs.astype(jnp.bfloat16), vh,
                     preferred_element_type=jnp.float32)              # [BH, L, D]

    attn = jnp.dot(_from_heads(ctx).astype(jnp.bfloat16), wo,
                   preferred_element_type=jnp.float32) + bo
    sa = _layernorm(attn + h, g1, be1)

    # --- feed-forward ---
    inner = jnp.dot(sa.astype(jnp.bfloat16), w1,
                    preferred_element_type=jnp.float32) + b1
    ff = jnp.dot(_gelu(inner).astype(jnp.bfloat16), w2,
                 preferred_element_type=jnp.float32) + b2
    return _layernorm(ff + sa, g2, be2)


# ------------------------- fused forward kernel -------------------------
def fused_forward_kernel(emb_ref, mask_ref, misc_ref, wqkvo_ref, wffn1_ref,
                         wffn2_ref, vecs_ref, b1s_ref, wp_ref, wc_ref, bc_ref,
                         out_ref):
    misc = misc_ref[...]                      # [3, H]: emb_ln_g, emb_ln_b, bp
    emb_g, emb_b, bp = misc[0:1], misc[1:2], misc[2:3]

    # additive attention bias, built ONCE in-kernel from the [B, L] mask
    bias2 = (1.0 - mask_ref[...]) * MASK_BIAS                  # [B, L]
    bias3 = jnp.broadcast_to(bias2[:, None, None, :],
                             (B, N_HEADS, L, L)).reshape(B * N_HEADS, L, L)

    h = _layernorm(emb_ref[...], emb_g, emb_b)                 # [B*L, H] f32

    for layer in range(N_LAYERS):
        wl = wqkvo_ref[layer]                  # [4, H, H] bf16
        wq, wk, wv, wo = wl[0], wl[1], wl[2], wl[3]
        w1 = wffn1_ref[layer]                  # [H, FFN] bf16
        w2 = wffn2_ref[layer]                  # [FFN, H] bf16
        vec = vecs_ref[layer]                  # [9, H]   f32
        bq, bk, bv, bo = vec[0:1], vec[1:2], vec[2:3], vec[3:4]
        g1, be1, b2 = vec[4:5], vec[5:6], vec[6:7]
        g2, be2 = vec[7:8], vec[8:9]
        b1 = b1s_ref[layer]                    # [1, FFN] f32
        h = _encoder_layer(h, bias3, wq, bq, wk, bk, wv, bv, wo, bo,
                           g1, be1, w1, b1, w2, b2, g2, be2)

    # CLS token of each example via one reshape + row-0 slice, padded to a full
    # 8-sublane tile so the final store is an unmasked full-tile vst.
    cls = h.reshape(B, L, H)[:, 0, :]                           # [B, H]
    cls = jnp.concatenate(
        [cls, jnp.zeros((OUT_ROWS - B, H), cls.dtype)], axis=0)  # [8, H]
    x = jnp.dot(cls.astype(jnp.bfloat16), wp_ref[...],
                preferred_element_type=jnp.float32) + bp
    x = jnp.maximum(x, 0.0)                                     # ReLU; dropout = id
    out_ref[...] = (jnp.dot(x.astype(jnp.bfloat16), wc_ref[...],
                            preferred_element_type=jnp.float32) + bc_ref[...])


# ------------------------- forward pass -------------------------
def forward(x, params):
    # x: [B, L, 2] int32 -- channel 0 = input_ids, channel 1 = attention_mask
    input_ids = x[:, :, 0]
    attn_mask = x[:, :, 1].astype(jnp.float32)                  # [B, L]

    # embedding gather is JAX glue; everything else runs in one fused kernel
    emb = params["word_emb"][input_ids] + params["pos_emb"][jnp.arange(L)][None, :, :]
    emb = emb.reshape(B * L, H).astype(jnp.float32)

    logits_pad = pl.pallas_call(
        fused_forward_kernel,
        out_shape=jax.ShapeDtypeStruct((OUT_ROWS, PAD_CLASSES), jnp.float32),
    )(emb, attn_mask, params["misc"], params["w_qkvo"], params["w_ffn1"],
      params["w_ffn2"], params["vecs"], params["b1s"], params["wp"],
      params["wc_pad"], params["bc_pad"])
    return logits_pad[:B, :NUM_CLASSES]


# ------------------------- deterministic parameter init -------------------------
def init_params(key):
    keys = jax.random.split(key, 4 + N_LAYERS)

    def lin(k, din, dout):
        kw, kb = jax.random.split(k)
        w = 0.02 * jax.random.normal(kw, (din, dout), jnp.float32)
        b = 0.02 * jax.random.normal(kb, (1, dout), jnp.float32)
        return w, b

    params = {
        "word_emb": 0.02 * jax.random.normal(keys[0], (VOCAB, H), jnp.float32),
        "pos_emb": 0.02 * jax.random.normal(keys[1], (MAX_POS, H), jnp.float32),
    }

    w_qkvo, w_ffn1, w_ffn2, vecs, b1s = [], [], [], [], []
    for l in range(N_LAYERS):
        lk = jax.random.split(keys[2 + l], 6)
        wq, bq = lin(lk[0], H, H)
        wq = wq * ATTN_SCALE                   # fold 1/sqrt(d_head) into q proj
        bq = bq * ATTN_SCALE
        wk, bk = lin(lk[1], H, H)
        wv, bv = lin(lk[2], H, H)
        wo, bo = lin(lk[3], H, H)
        w1, b1 = lin(lk[4], H, FFN)
        w2, b2 = lin(lk[5], FFN, H)
        g1 = jnp.ones((1, H), jnp.float32); be1 = jnp.zeros((1, H), jnp.float32)
        g2 = jnp.ones((1, H), jnp.float32); be2 = jnp.zeros((1, H), jnp.float32)
        w_qkvo.append(jnp.stack([wq, wk, wv, wo], axis=0))
        w_ffn1.append(w1)
        w_ffn2.append(w2)
        vecs.append(jnp.concatenate([bq, bk, bv, bo, g1, be1, b2, g2, be2], axis=0))
        b1s.append(b1)

    params["w_qkvo"] = jnp.stack(w_qkvo, 0).astype(jnp.bfloat16)   # [NL, 4, H, H]
    params["w_ffn1"] = jnp.stack(w_ffn1, 0).astype(jnp.bfloat16)   # [NL, H, FFN]
    params["w_ffn2"] = jnp.stack(w_ffn2, 0).astype(jnp.bfloat16)   # [NL, FFN, H]
    params["vecs"] = jnp.stack(vecs, 0)                            # [NL, 9, H] f32
    params["b1s"] = jnp.stack(b1s, 0)                              # [NL, 1, FFN] f32

    kh = jax.random.split(keys[2 + N_LAYERS], 2)
    wp, bp = lin(kh[0], H, H)                                      # pre_classifier
    wc, bc = lin(kh[1], H, NUM_CLASSES)                            # classifier
    params["wp"] = wp.astype(jnp.bfloat16)
    # misc slab: [emb_ln_gamma; emb_ln_beta; pre_classifier bias]
    params["misc"] = jnp.concatenate(
        [jnp.ones((1, H), jnp.float32), jnp.zeros((1, H), jnp.float32), bp], axis=0)
    # pad the classifier to a lane-dense 128-wide output; extra columns are zero
    wc_pad = jnp.zeros((H, PAD_CLASSES), jnp.float32).at[:, :NUM_CLASSES].set(wc)
    params["wc_pad"] = wc_pad.astype(jnp.bfloat16)
    params["bc_pad"] = jnp.zeros((1, PAD_CLASSES), jnp.float32).at[:, :NUM_CLASSES].set(bc)
    return params


if __name__ == "__main__":
    key = jax.random.PRNGKey(0)
    k_ids, k_par = jax.random.split(key)

    input_ids = jax.random.randint(k_ids, (B, L), 0, VOCAB, dtype=jnp.int32)
    attention_mask = jnp.ones((B, L), jnp.int32).at[1, 5:].set(0)  # pad tail of 2nd ex.
    # mirrors torch.stack((input_ids, attention_mask), dim=2) from the transform
    x = jnp.stack((input_ids, attention_mask), axis=2)             # [B, L, 2]

    params = init_params(k_par)
    logits = jax.jit(forward)(x, params)
    jax.block_until_ready(logits)
    assert logits.shape == (B, NUM_CLASSES) and logits.dtype == jnp.float32
    print("KERNEL_OK")
</pallas_src>

<mosaic_0001>
module attributes {stable_mosaic.version = 11 : i64} {
  func.func @fused_forward_kernel(%arg0: memref<16x32xf32, #tpu.memory_space<vmem>>, %arg1: memref<2x8xf32, #tpu.memory_space<vmem>>, %arg2: memref<3x32xf32, #tpu.memory_space<vmem>>, %arg3: memref<2x4x32x32xbf16, #tpu.memory_space<vmem>>, %arg4: memref<2x32x128xbf16, #tpu.memory_space<vmem>>, %arg5: memref<2x128x32xbf16, #tpu.memory_space<vmem>>, %arg6: memref<2x9x32xf32, #tpu.memory_space<vmem>>, %arg7: memref<2x1x128xf32, #tpu.memory_space<vmem>>, %arg8: memref<32x32xbf16, #tpu.memory_space<vmem>>, %arg9: memref<32x128xbf16, #tpu.memory_space<vmem>>, %arg10: memref<1x128xf32, #tpu.memory_space<vmem>>, %arg11: memref<8x128xf32, #tpu.memory_space<vmem>>) attributes {dimension_semantics = [], scalar_prefetch = 0 : i64, scratch_operands = 0 : i64, tpu.core_type = #tpu.core_type<tc>} {
    %c0 = arith.constant 0 : index
    %c0_0 = arith.constant 0 : index
    %0 = vector.load %arg2[%c0, %c0_0] : memref<3x32xf32, #tpu.memory_space<vmem>>, vector<3x32xf32>
    %1 = vector.extract_strided_slice %0 {offsets = [0, 0], sizes = [1, 32], strides = [1, 1]} : vector<3x32xf32> to vector<1x32xf32>
    %2 = vector.extract_strided_slice %0 {offsets = [1, 0], sizes = [1, 32], strides = [1, 1]} : vector<3x32xf32> to vector<1x32xf32>
    %3 = vector.extract_strided_slice %0 {offsets = [2, 0], sizes = [1, 32], strides = [1, 1]} : vector<3x32xf32> to vector<1x32xf32>
    %c0_1 = arith.constant 0 : index
    %c0_2 = arith.constant 0 : index
    %4 = vector.load %arg1[%c0_1, %c0_2] : memref<2x8xf32, #tpu.memory_space<vmem>>, vector<2x8xf32>
    %cst = arith.constant 1.000000e+00 : f32
    %5 = vector.broadcast %cst : f32 to vector<2x8xf32>
    %6 = arith.subf %5, %4 : vector<2x8xf32>
    %cst_3 = arith.constant -1.000000e+09 : f32
    %7 = vector.broadcast %cst_3 : f32 to vector<2x8xf32>
    %8 = arith.mulf %6, %7 : vector<2x8xf32>
    %9 = vector.shape_cast %8 : vector<2x8xf32> to vector<2x1x1x8xf32>
    %10 = vector.shape_cast %9 : vector<2x1x1x8xf32> to vector<2x1x1x8xf32>
    %11 = vector.broadcast %10 : vector<2x1x1x8xf32> to vector<2x4x8x8xf32>
    %12 = vector.shape_cast %11 : vector<2x4x8x8xf32> to vector<8x8x8xf32>
    %c0_4 = arith.constant 0 : index
    %c0_5 = arith.constant 0 : index
    %13 = vector.load %arg0[%c0_4, %c0_5] : memref<16x32xf32, #tpu.memory_space<vmem>>, vector<16x32xf32>
    %cst_6 = arith.constant dense<0.000000e+00> : vector<16xf32>
    %14 = vector.multi_reduction <add>, %13, %cst_6 [1] : vector<16x32xf32> to vector<16xf32>
    %15 = vector.shape_cast %14 : vector<16xf32> to vector<16x1xf32>
    %cst_7 = arith.constant 3.200000e+01 : f32
    %16 = vector.broadcast %cst_7 : f32 to vector<16x1xf32>
    %17 = arith.divf %15, %16 : vector<16x1xf32>
    %18 = vector.broadcast %17 : vector<16x1xf32> to vector<16x32xf32>
    %19 = arith.subf %13, %18 : vector<16x32xf32>
    %20 = arith.mulf %19, %19 : vector<16x32xf32>
    %cst_8 = arith.constant dense<0.000000e+00> : vector<16xf32>
    %21 = vector.multi_reduction <add>, %20, %cst_8 [1] : vector<16x32xf32> to vector<16xf32>
    %22 = vector.shape_cast %21 : vector<16xf32> to vector<16x1xf32>
    %cst_9 = arith.constant 3.200000e+01 : f32
    %23 = vector.broadcast %cst_9 : f32 to vector<16x1xf32>
    %24 = arith.divf %22, %23 : vector<16x1xf32>
    %25 = vector.broadcast %17 : vector<16x1xf32> to vector<16x32xf32>
    %26 = arith.subf %13, %25 : vector<16x32xf32>
    %cst_10 = arith.constant 9.99999996E-13 : f32
    %27 = vector.broadcast %cst_10 : f32 to vector<16x1xf32>
    %28 = arith.addf %24, %27 : vector<16x1xf32>
    %29 = math.rsqrt %28 : vector<16x1xf32>
    %30 = vector.broadcast %29 : vector<16x1xf32> to vector<16x32xf32>
    %31 = arith.mulf %26, %30 : vector<16x32xf32>
    %32 = vector.broadcast %1 : vector<1x32xf32> to vector<16x32xf32>
    %33 = arith.mulf %31, %32 : vector<16x32xf32>
    %34 = vector.broadcast %2 : vector<1x32xf32> to vector<16x32xf32>
    %35 = arith.addf %33, %34 : vector<16x32xf32>
    %c0_11 = arith.constant 0 : index
    %c0_12 = arith.constant 0 : index
    %c0_13 = arith.constant 0 : index
    %c0_14 = arith.constant 0 : index
    %36 = vector.load %arg3[%c0_11, %c0_12, %c0_13, %c0_14] : memref<2x4x32x32xbf16, #tpu.memory_space<vmem>>, vector<1x4x32x32xbf16>
    %37 = vector.shape_cast %36 : vector<1x4x32x32xbf16> to vector<4x32x32xbf16>
    %38 = vector.extract_strided_slice %37 {offsets = [0, 0, 0], sizes = [1, 32, 32], strides = [1, 1, 1]} : vector<4x32x32xbf16> to vector<1x32x32xbf16>
    %39 = vector.shape_cast %38 : vector<1x32x32xbf16> to vector<32x32xbf16>
    %40 = vector.extract_strided_slice %37 {offsets = [1, 0, 0], sizes = [1, 32, 32], strides = [1, 1, 1]} : vector<4x32x32xbf16> to vector<1x32x32xbf16>
    %41 = vector.shape_cast %40 : vector<1x32x32xbf16> to vector<32x32xbf16>
    %42 = vector.extract_strided_slice %37 {offsets = [2, 0, 0], sizes = [1, 32, 32], strides = [1, 1, 1]} : vector<4x32x32xbf16> to vector<1x32x32xbf16>
    %43 = vector.shape_cast %42 : vector<1x32x32xbf16> to vector<32x32xbf16>
    %44 = vector.extract_strided_slice %37 {offsets = [3, 0, 0], sizes = [1, 32, 32], strides = [1, 1, 1]} : vector<4x32x32xbf16> to vector<1x32x32xbf16>
    %45 = vector.shape_cast %44 : vector<1x32x32xbf16> to vector<32x32xbf16>
    %c0_15 = arith.constant 0 : index
    %c0_16 = arith.constant 0 : index
    %c0_17 = arith.constant 0 : index
    %46 = vector.load %arg4[%c0_15, %c0_16, %c0_17] : memref<2x32x128xbf16, #tpu.memory_space<vmem>>, vector<1x32x128xbf16>
    %47 = vector.shape_cast %46 : vector<1x32x128xbf16> to vector<32x128xbf16>
    %c0_18 = arith.constant 0 : index
    %c0_19 = arith.constant 0 : index
    %c0_20 = arith.constant 0 : index
    %48 = vector.load %arg5[%c0_18, %c0_19, %c0_20] : memref<2x128x32xbf16, #tpu.memory_space<vmem>>, vector<1x128x32xbf16>
    %49 = vector.shape_cast %48 : vector<1x128x32xbf16> to vector<128x32xbf16>
    %c0_21 = arith.constant 0 : index
    %c0_22 = arith.constant 0 : index
    %c0_23 = arith.constant 0 : index
    %50 = vector.load %arg6[%c0_21, %c0_22, %c0_23] : memref<2x9x32xf32, #tpu.memory_space<vmem>>, vector<1x9x32xf32>
    %51 = vector.shape_cast %50 : vector<1x9x32xf32> to vector<9x32xf32>
    %52 = vector.extract_strided_slice %51 {offsets = [0, 0], sizes = [1, 32], strides = [1, 1]} : vector<9x32xf32> to vector<1x32xf32>
    %53 = vector.extract_strided_slice %51 {offsets = [1, 0], sizes = [1, 32], strides = [1, 1]} : vector<9x32xf32> to vector<1x32xf32>
    %54 = vector.extract_strided_slice %51 {offsets = [2, 0], sizes = [1, 32], strides = [1, 1]} : vector<9x32xf32> to vector<1x32xf32>
    %55 = vector.extract_strided_slice %51 {offsets = [3, 0], sizes = [1, 32], strides = [1, 1]} : vector<9x32xf32> to vector<1x32xf32>
    %56 = vector.extract_strided_slice %51 {offsets = [4, 0], sizes = [1, 32], strides = [1, 1]} : vector<9x32xf32> to vector<1x32xf32>
    %57 = vector.extract_strided_slice %51 {offsets = [5, 0], sizes = [1, 32], strides = [1, 1]} : vector<9x32xf32> to vector<1x32xf32>
    %58 = vector.extract_strided_slice %51 {offsets = [6, 0], sizes = [1, 32], strides = [1, 1]} : vector<9x32xf32> to vector<1x32xf32>
    %59 = vector.extract_strided_slice %51 {offsets = [7, 0], sizes = [1, 32], strides = [1, 1]} : vector<9x32xf32> to vector<1x32xf32>
    %60 = vector.extract_strided_slice %51 {offsets = [8, 0], sizes = [1, 32], strides = [1, 1]} : vector<9x32xf32> to vector<1x32xf32>
    %c0_24 = arith.constant 0 : index
    %c0_25 = arith.constant 0 : index
    %c0_26 = arith.constant 0 : index
    %61 = vector.load %arg7[%c0_24, %c0_25, %c0_26] : memref<2x1x128xf32, #tpu.memory_space<vmem>>, vector<1x1x128xf32>
    %62 = vector.shape_cast %61 : vector<1x1x128xf32> to vector<1x128xf32>
    %63 = arith.truncf %35 : vector<16x32xf32> to vector<16x32xbf16>
    %cst_27 = arith.constant dense<0.000000e+00> : vector<16x32xf32>
    %64 = tpu.matmul %63, %39, %cst_27 {dimension_numbers = #tpu.dot_dimension_numbers<[1], [0], [0], [1], [0, 0, 1, 1], [], []>} : vector<16x32xbf16>, vector<32x32xbf16>, vector<16x32xf32> -> vector<16x32xf32>
    %65 = vector.broadcast %52 : vector<1x32xf32> to vector<16x32xf32>
    %66 = arith.addf %64, %65 : vector<16x32xf32>
    %cst_28 = arith.constant dense<0.000000e+00> : vector<16x32xf32>
    %67 = tpu.matmul %63, %41, %cst_28 {dimension_numbers = #tpu.dot_dimension_numbers<[1], [0], [0], [1], [0, 0, 1, 1], [], []>} : vector<16x32xbf16>, vector<32x32xbf16>, vector<16x32xf32> -> vector<16x32xf32>
    %68 = vector.broadcast %53 : vector<1x32xf32> to vector<16x32xf32>
    %69 = arith.addf %67, %68 : vector<16x32xf32>
    %cst_29 = arith.constant dense<0.000000e+00> : vector<16x32xf32>
    %70 = tpu.matmul %63, %43, %cst_29 {dimension_numbers = #tpu.dot_dimension_numbers<[1], [0], [0], [1], [0, 0, 1, 1], [], []>} : vector<16x32xbf16>, vector<32x32xbf16>, vector<16x32xf32> -> vector<16x32xf32>
    %71 = vector.broadcast %54 : vector<1x32xf32> to vector<16x32xf32>
    %72 = arith.addf %70, %71 : vector<16x32xf32>
    %73 = vector.extract_strided_slice %66 {offsets = [0, 0], sizes = [16, 8], strides = [1, 1]} : vector<16x32xf32> to vector<16x8xf32>
    %74 = vector.shape_cast %73 : vector<16x8xf32> to vector<2x1x8x8xf32>
    %75 = vector.extract_strided_slice %66 {offsets = [0, 8], sizes = [16, 8], strides = [1, 1]} : vector<16x32xf32> to vector<16x8xf32>
    %76 = vector.shape_cast %75 : vector<16x8xf32> to vector<2x1x8x8xf32>
    %77 = vector.extract_strided_slice %66 {offsets = [0, 16], sizes = [16, 8], strides = [1, 1]} : vector<16x32xf32> to vector<16x8xf32>
    %78 = vector.shape_cast %77 : vector<16x8xf32> to vector<2x1x8x8xf32>
    %79 = vector.extract_strided_slice %66 {offsets = [0, 24], sizes = [16, 8], strides = [1, 1]} : vector<16x32xf32> to vector<16x8xf32>
    %80 = vector.shape_cast %79 : vector<16x8xf32> to vector<2x1x8x8xf32>
    %81 = tpu.concatenate %74, %76, %78, %80 in 1 : vector<2x1x8x8xf32>, vector<2x1x8x8xf32>, vector<2x1x8x8xf32>, vector<2x1x8x8xf32> -> vector<2x4x8x8xf32>
    %82 = vector.shape_cast %81 : vector<2x4x8x8xf32> to vector<8x8x8xf32>
    %83 = arith.truncf %82 : vector<8x8x8xf32> to vector<8x8x8xbf16>
    %84 = vector.extract_strided_slice %69 {offsets = [0, 0], sizes = [16, 8], strides = [1, 1]} : vector<16x32xf32> to vector<16x8xf32>
    %85 = vector.shape_cast %84 : vector<16x8xf32> to vector<2x1x8x8xf32>
    %86 = vector.extract_strided_slice %69 {offsets = [0, 8], sizes = [16, 8], strides = [1, 1]} : vector<16x32xf32> to vector<16x8xf32>
    %87 = vector.shape_cast %86 : vector<16x8xf32> to vector<2x1x8x8xf32>
    %88 = vector.extract_strided_slice %69 {offsets = [0, 16], sizes = [16, 8], strides = [1, 1]} : vector<16x32xf32> to vector<16x8xf32>
    %89 = vector.shape_cast %88 : vector<16x8xf32> to vector<2x1x8x8xf32>
    %90 = vector.extract_strided_slice %69 {offsets = [0, 24], sizes = [16, 8], strides = [1, 1]} : vector<16x32xf32> to vector<16x8xf32>
    %91 = vector.shape_cast %90 : vector<16x8xf32> to vector<2x1x8x8xf32>
    %92 = tpu.concatenate %85, %87, %89, %91 in 1 : vector<2x1x8x8xf32>, vector<2x1x8x8xf32>, vector<2x1x8x8xf32>, vector<2x1x8x8xf32> -> vector<2x4x8x8xf32>
    %93 = vector.shape_cast %92 : vector<2x4x8x8xf32> to vector<8x8x8xf32>
    %94 = arith.truncf %93 : vector<8x8x8xf32> to vector<8x8x8xbf16>
    %95 = vector.extract_strided_slice %72 {offsets = [0, 0], sizes = [16, 8], strides = [1, 1]} : vector<16x32xf32> to vector<16x8xf32>
    %96 = vector.shape_cast %95 : vector<16x8xf32> to vector<2x1x8x8xf32>
    %97 = vector.extract_strided_slice %72 {offsets = [0, 8], sizes = [16, 8], strides = [1, 1]} : vector<16x32xf32> to vector<16x8xf32>
    %98 = vector.shape_cast %97 : vector<16x8xf32> to vector<2x1x8x8xf32>
    %99 = vector.extract_strided_slice %72 {offsets = [0, 16], sizes = [16, 8], strides = [1, 1]} : vector<16x32xf32> to vector<16x8xf32>
    %100 = vector.shape_cast %99 : vector<16x8xf32> to vector<2x1x8x8xf32>
    %101 = vector.extract_strided_slice %72 {offsets = [0, 24], sizes = [16, 8], strides = [1, 1]} : vector<16x32xf32> to vector<16x8xf32>
    %102 = vector.shape_cast %101 : vector<16x8xf32> to vector<2x1x8x8xf32>
    %103 = tpu.concatenate %96, %98, %100, %102 in 1 : vector<2x1x8x8xf32>, vector<2x1x8x8xf32>, vector<2x1x8x8xf32>, vector<2x1x8x8xf32> -> vector<2x4x8x8xf32>
    %104 = vector.shape_cast %103 : vector<2x4x8x8xf32> to vector<8x8x8xf32>
    %105 = arith.truncf %104 : vector<8x8x8xf32> to vector<8x8x8xbf16>
    "tpu.trace_start"() <{level = 10 : i32, message = "hld,hmd->hlm"}> : () -> ()
    %cst_30 = arith.constant dense<0.000000e+00> : vector<8x8x8xf32>
    %106 = tpu.matmul %83, %94, %cst_30 {dimension_numbers = #tpu.dot_dimension_numbers<[2], [2], [1], [1], [0, 0, 0, 1, 1, 1], [0], [0]>} : vector<8x8x8xbf16>, vector<8x8x8xbf16>, vector<8x8x8xf32> -> vector<8x8x8xf32>
    "tpu.trace_stop"() : () -> ()
    %107 = arith.addf %106, %12 : vector<8x8x8xf32>
    %cst_31 = arith.constant dense<0xFF800000> : vector<8x8xf32>
    %108 = vector.multi_reduction <maximumf>, %107, %cst_31 [2] : vector<8x8x8xf32> to vector<8x8xf32>
    %109 = vector.shape_cast %108 : vector<8x8xf32> to vector<8x8x1xf32>
    %110 = vector.broadcast %109 : vector<8x8x1xf32> to vector<8x8x8xf32>
    %111 = arith.subf %107, %110 : vector<8x8x8xf32>
    %112 = math.exp %111 : vector<8x8x8xf32>
    %cst_32 = arith.constant dense<0.000000e+00> : vector<8x8xf32>
    %113 = vector.multi_reduction <add>, %112, %cst_32 [2] : vector<8x8x8xf32> to vector<8x8xf32>
    %114 = vector.shape_cast %113 : vector<8x8xf32> to vector<8x8x1xf32>
    %115 = tpu.reciprocal %114 {approx = true} : vector<8x8x1xf32> -> vector<8x8x1xf32>
    %116 = vector.broadcast %115 : vector<8x8x1xf32> to vector<8x8x8xf32>
    %117 = arith.mulf %112, %116 : vector<8x8x8xf32>
    %118 = arith.truncf %117 : vector<8x8x8xf32> to vector<8x8x8xbf16>
    "tpu.trace_start"() <{level = 10 : i32, message = "hlm,hmd->hld"}> : () -> ()
    %cst_33 = arith.constant dense<0.000000e+00> : vector<8x8x8xf32>
    %119 = tpu.matmul %118, %105, %cst_33 {dimension_numbers = #tpu.dot_dimension_numbers<[2], [1], [1], [2], [0, 0, 0, 1, 1, 2], [0], [0]>} : vector<8x8x8xbf16>, vector<8x8x8xbf16>, vector<8x8x8xf32> -> vector<8x8x8xf32>
    "tpu.trace_stop"() : () -> ()
    %120 = vector.shape_cast %119 : vector<8x8x8xf32> to vector<2x4x8x8xf32>
    %121 = vector.extract_strided_slice %120 {offsets = [0, 0, 0, 0], sizes = [2, 1, 8, 8], strides = [1, 1, 1, 1]} : vector<2x4x8x8xf32> to vector<2x1x8x8xf32>
    %122 = vector.shape_cast %121 : vector<2x1x8x8xf32> to vector<2x8x8xf32>
    %123 = vector.shape_cast %122 : vector<2x8x8xf32> to vector<16x8xf32>
    %124 = vector.extract_strided_slice %120 {offsets = [0, 1, 0, 0], sizes = [2, 1, 8, 8], strides = [1, 1, 1, 1]} : vector<2x4x8x8xf32> to vector<2x1x8x8xf32>
    %125 = vector.shape_cast %124 : vector<2x1x8x8xf32> to vector<2x8x8xf32>
    %126 = vector.shape_cast %125 : vector<2x8x8xf32> to vector<16x8xf32>
    %127 = vector.extract_strided_slice %120 {offsets = [0, 2, 0, 0], sizes = [2, 1, 8, 8], strides = [1, 1, 1, 1]} : vector<2x4x8x8xf32> to vector<2x1x8x8xf32>
    %128 = vector.shape_cast %127 : vector<2x1x8x8xf32> to vector<2x8x8xf32>
    %129 = vector.shape_cast %128 : vector<2x8x8xf32> to vector<16x8xf32>
    %130 = vector.extract_strided_slice %120 {offsets = [0, 3, 0, 0], sizes = [2, 1, 8, 8], strides = [1, 1, 1, 1]} : vector<2x4x8x8xf32> to vector<2x1x8x8xf32>
    %131 = vector.shape_cast %130 : vector<2x1x8x8xf32> to vector<2x8x8xf32>
    %132 = vector.shape_cast %131 : vector<2x8x8xf32> to vector<16x8xf32>
    %133 = tpu.concatenate %123, %126, %129, %132 in 1 : vector<16x8xf32>, vector<16x8xf32>, vector<16x8xf32>, vector<16x8xf32> -> vector<16x32xf32>
    %134 = arith.truncf %133 : vector<16x32xf32> to vector<16x32xbf16>
    %cst_34 = arith.constant dense<0.000000e+00> : vector<16x32xf32>
    %135 = tpu.matmul %134, %45, %cst_34 {dimension_numbers = #tpu.dot_dimension_numbers<[1], [0], [0], [1], [0, 0, 1, 1], [], []>} : vector<16x32xbf16>, vector<32x32xbf16>, vector<16x32xf32> -> vector<16x32xf32>
    %136 = vector.broadcast %55 : vector<1x32xf32> to vector<16x32xf32>
    %137 = arith.addf %135, %136 : vector<16x32xf32>
    %138 = arith.addf %137, %35 : vector<16x32xf32>
    %cst_35 = arith.constant dense<0.000000e+00> : vector<16xf32>
    %139 = vector.multi_reduction <add>, %138, %cst_35 [1] : vector<16x32xf32> to vector<16xf32>
    %140 = vector.shape_cast %139 : vector<16xf32> to vector<16x1xf32>
    %cst_36 = arith.constant 3.200000e+01 : f32
    %141 = vector.broadcast %cst_36 : f32 to vector<16x1xf32>
    %142 = arith.divf %140, %141 : vector<16x1xf32>
    %143 = vector.broadcast %142 : vector<16x1xf32> to vector<16x32xf32>
    %144 = arith.subf %138, %143 : vector<16x32xf32>
    %145 = arith.mulf %144, %144 : vector<16x32xf32>
    %cst_37 = arith.constant dense<0.000000e+00> : vector<16xf32>
    %146 = vector.multi_reduction <add>, %145, %cst_37 [1] : vector<16x32xf32> to vector<16xf32>
    %147 = vector.shape_cast %146 : vector<16xf32> to vector<16x1xf32>
    %cst_38 = arith.constant 3.200000e+01 : f32
    %148 = vector.broadcast %cst_38 : f32 to vector<16x1xf32>
    %149 = arith.divf %147, %148 : vector<16x1xf32>
    %150 = vector.broadcast %142 : vector<16x1xf32> to vector<16x32xf32>
    %151 = arith.subf %138, %150 : vector<16x32xf32>
    %cst_39 = arith.constant 9.99999996E-13 : f32
    %152 = vector.broadcast %cst_39 : f32 to vector<16x1xf32>
    %153 = arith.addf %149, %152 : vector<16x1xf32>
    %154 = math.rsqrt %153 : vector<16x1xf32>
    %155 = vector.broadcast %154 : vector<16x1xf32> to vector<16x32xf32>
    %156 = arith.mulf %151, %155 : vector<16x32xf32>
    %157 = vector.broadcast %56 : vector<1x32xf32> to vector<16x32xf32>
    %158 = arith.mulf %156, %157 : vector<16x32xf32>
    %159 = vector.broadcast %57 : vector<1x32xf32> to vector<16x32xf32>
    %160 = arith.addf %158, %159 : vector<16x32xf32>
    %161 = arith.truncf %160 : vector<16x32xf32> to vector<16x32xbf16>
    %cst_40 = arith.constant dense<0.000000e+00> : vector<16x128xf32>
    %162 = tpu.matmul %161, %47, %cst_40 {dimension_numbers = #tpu.dot_dimension_numbers<[1], [0], [0], [1], [0, 0, 1, 1], [], []>} : vector<16x32xbf16>, vector<32x128xbf16>, vector<16x128xf32> -> vector<16x128xf32>
    %163 = vector.broadcast %62 : vector<1x128xf32> to vector<16x128xf32>
    %164 = arith.addf %162, %163 : vector<16x128xf32>
    %cst_41 = arith.constant 5.000000e-01 : f32
    %165 = vector.broadcast %cst_41 : f32 to vector<16x128xf32>
    %166 = arith.mulf %165, %164 : vector<16x128xf32>
    %cst_42 = arith.constant 4.471500e-02 : f32
    %167 = vector.broadcast %cst_42 : f32 to vector<16x128xf32>
    %168 = arith.mulf %167, %164 : vector<16x128xf32>
    %169 = arith.mulf %168, %164 : vector<16x128xf32>
    %170 = arith.mulf %169, %164 : vector<16x128xf32>
    %171 = arith.addf %164, %170 : vector<16x128xf32>
    %cst_43 = arith.constant 0.797884583 : f32
    %172 = vector.broadcast %cst_43 : f32 to vector<16x128xf32>
    %173 = arith.mulf %172, %171 : vector<16x128xf32>
    %174 = math.tanh %173 : vector<16x128xf32>
    %cst_44 = arith.constant 1.000000e+00 : f32
    %175 = vector.broadcast %cst_44 : f32 to vector<16x128xf32>
    %176 = arith.addf %175, %174 : vector<16x128xf32>
    %177 = arith.mulf %166, %176 : vector<16x128xf32>
    %178 = arith.truncf %177 : vector<16x128xf32> to vector<16x128xbf16>
    %cst_45 = arith.constant dense<0.000000e+00> : vector<16x32xf32>
    %179 = tpu.matmul %178, %49, %cst_45 {dimension_numbers = #tpu.dot_dimension_numbers<[1], [0], [0], [1], [0, 0, 1, 1], [], []>} : vector<16x128xbf16>, vector<128x32xbf16>, vector<16x32xf32> -> vector<16x32xf32>
    %180 = vector.broadcast %58 : vector<1x32xf32> to vector<16x32xf32>
    %181 = arith.addf %179, %180 : vector<16x32xf32>
    %182 = arith.addf %181, %160 : vector<16x32xf32>
    %cst_46 = arith.constant dense<0.000000e+00> : vector<16xf32>
    %183 = vector.multi_reduction <add>, %182, %cst_46 [1] : vector<16x32xf32> to vector<16xf32>
    %184 = vector.shape_cast %183 : vector<16xf32> to vector<16x1xf32>
    %cst_47 = arith.constant 3.200000e+01 : f32
    %185 = vector.broadcast %cst_47 : f32 to vector<16x1xf32>
    %186 = arith.divf %184, %185 : vector<16x1xf32>
    %187 = vector.broadcast %186 : vector<16x1xf32> to vector<16x32xf32>
    %188 = arith.subf %182, %187 : vector<16x32xf32>
    %189 = arith.mulf %188, %188 : vector<16x32xf32>
    %cst_48 = arith.constant dense<0.000000e+00> : vector<16xf32>
    %190 = vector.multi_reduction <add>, %189, %cst_48 [1] : vector<16x32xf32> to vector<16xf32>
    %191 = vector.shape_cast %190 : vector<16xf32> to vector<16x1xf32>
    %cst_49 = arith.constant 3.200000e+01 : f32
    %192 = vector.broadcast %cst_49 : f32 to vector<16x1xf32>
    %193 = arith.divf %191, %192 : vector<16x1xf32>
    %194 = vector.broadcast %186 : vector<16x1xf32> to vector<16x32xf32>
    %195 = arith.subf %182, %194 : vector<16x32xf32>
    %cst_50 = arith.constant 9.99999996E-13 : f32
    %196 = vector.broadcast %cst_50 : f32 to vector<16x1xf32>
    %197 = arith.addf %193, %196 : vector<16x1xf32>
    %198 = math.rsqrt %197 : vector<16x1xf32>
    %199 = vector.broadcast %198 : vector<16x1xf32> to vector<16x32xf32>
    %200 = arith.mulf %195, %199 : vector<16x32xf32>
    %201 = vector.broadcast %59 : vector<1x32xf32> to vector<16x32xf32>
    %202 = arith.mulf %200, %201 : vector<16x32xf32>
    %203 = vector.broadcast %60 : vector<1x32xf32> to vector<16x32xf32>
    %204 = arith.addf %202, %203 : vector<16x32xf32>
    %c1 = arith.constant 1 : index
    %c0_51 = arith.constant 0 : index
    %c0_52 = arith.constant 0 : index
    %c0_53 = arith.constant 0 : index
    %205 = vector.load %arg3[%c1, %c0_51, %c0_52, %c0_53] : memref<2x4x32x32xbf16, #tpu.memory_space<vmem>>, vector<1x4x32x32xbf16>
    %206 = vector.shape_cast %205 : vector<1x4x32x32xbf16> to vector<4x32x32xbf16>
    %207 = vector.extract_strided_slice %206 {offsets = [0, 0, 0], sizes = [1, 32, 32], strides = [1, 1, 1]} : vector<4x32x32xbf16> to vector<1x32x32xbf16>
    %208 = vector.shape_cast %207 : vector<1x32x32xbf16> to vector<32x32xbf16>
    %209 = vector.extract_strided_slice %206 {offsets = [1, 0, 0], sizes = [1, 32, 32], strides = [1, 1, 1]} : vector<4x32x32xbf16> to vector<1x32x32xbf16>
    %210 = vector.shape_cast %209 : vector<1x32x32xbf16> to vector<32x32xbf16>
    %211 = vector.extract_strided_slice %206 {offsets = [2, 0, 0], sizes = [1, 32, 32], strides = [1, 1, 1]} : vector<4x32x32xbf16> to vector<1x32x32xbf16>
    %212 = vector.shape_cast %211 : vector<1x32x32xbf16> to vector<32x32xbf16>
    %213 = vector.extract_strided_slice %206 {offsets = [3, 0, 0], sizes = [1, 32, 32], strides = [1, 1, 1]} : vector<4x32x32xbf16> to vector<1x32x32xbf16>
    %214 = vector.shape_cast %213 : vector<1x32x32xbf16> to vector<32x32xbf16>
    %c1_54 = arith.constant 1 : index
    %c0_55 = arith.constant 0 : index
    %c0_56 = arith.constant 0 : index
    %215 = vector.load %arg4[%c1_54, %c0_55, %c0_56] : memref<2x32x128xbf16, #tpu.memory_space<vmem>>, vector<1x32x128xbf16>
    %216 = vector.shape_cast %215 : vector<1x32x128xbf16> to vector<32x128xbf16>
    %c1_57 = arith.constant 1 : index
    %c0_58 = arith.constant 0 : index
    %c0_59 = arith.constant 0 : index
    %217 = vector.load %arg5[%c1_57, %c0_58, %c0_59] : memref<2x128x32xbf16, #tpu.memory_space<vmem>>, vector<1x128x32xbf16>
    %218 = vector.shape_cast %217 : vector<1x128x32xbf16> to vector<128x32xbf16>
    %c1_60 = arith.constant 1 : index
    %c0_61 = arith.constant 0 : index
    %c0_62 = arith.constant 0 : index
    %219 = vector.load %arg6[%c1_60, %c0_61, %c0_62] : memref<2x9x32xf32, #tpu.memory_space<vmem>>, vector<1x9x32xf32>
    %220 = vector.shape_cast %219 : vector<1x9x32xf32> to vector<9x32xf32>
    %221 = vector.extract_strided_slice %220 {offsets = [0, 0], sizes = [1, 32], strides = [1, 1]} : vector<9x32xf32> to vector<1x32xf32>
    %222 = vector.extract_strided_slice %220 {offsets = [1, 0], sizes = [1, 32], strides = [1, 1]} : vector<9x32xf32> to vector<1x32xf32>
    %223 = vector.extract_strided_slice %220 {offsets = [2, 0], sizes = [1, 32], strides = [1, 1]} : vector<9x32xf32> to vector<1x32xf32>
    %224 = vector.extract_strided_slice %220 {offsets = [3, 0], sizes = [1, 32], strides = [1, 1]} : vector<9x32xf32> to vector<1x32xf32>
    %225 = vector.extract_strided_slice %220 {offsets = [4, 0], sizes = [1, 32], strides = [1, 1]} : vector<9x32xf32> to vector<1x32xf32>
    %226 = vector.extract_strided_slice %220 {offsets = [5, 0], sizes = [1, 32], strides = [1, 1]} : vector<9x32xf32> to vector<1x32xf32>
    %227 = vector.extract_strided_slice %220 {offsets = [6, 0], sizes = [1, 32], strides = [1, 1]} : vector<9x32xf32> to vector<1x32xf32>
    %228 = vector.extract_strided_slice %220 {offsets = [7, 0], sizes = [1, 32], strides = [1, 1]} : vector<9x32xf32> to vector<1x32xf32>
    %229 = vector.extract_strided_slice %220 {offsets = [8, 0], sizes = [1, 32], strides = [1, 1]} : vector<9x32xf32> to vector<1x32xf32>
    %c1_63 = arith.constant 1 : index
    %c0_64 = arith.constant 0 : index
    %c0_65 = arith.constant 0 : index
    %230 = vector.load %arg7[%c1_63, %c0_64, %c0_65] : memref<2x1x128xf32, #tpu.memory_space<vmem>>, vector<1x1x128xf32>
    %231 = vector.shape_cast %230 : vector<1x1x128xf32> to vector<1x128xf32>
    %232 = arith.truncf %204 : vector<16x32xf32> to vector<16x32xbf16>
    %cst_66 = arith.constant dense<0.000000e+00> : vector<16x32xf32>
    %233 = tpu.matmul %232, %208, %cst_66 {dimension_numbers = #tpu.dot_dimension_numbers<[1], [0], [0], [1], [0, 0, 1, 1], [], []>} : vector<16x32xbf16>, vector<32x32xbf16>, vector<16x32xf32> -> vector<16x32xf32>
    %234 = vector.broadcast %221 : vector<1x32xf32> to vector<16x32xf32>
    %235 = arith.addf %233, %234 : vector<16x32xf32>
    %cst_67 = arith.constant dense<0.000000e+00> : vector<16x32xf32>
    %236 = tpu.matmul %232, %210, %cst_67 {dimension_numbers = #tpu.dot_dimension_numbers<[1], [0], [0], [1], [0, 0, 1, 1], [], []>} : vector<16x32xbf16>, vector<32x32xbf16>, vector<16x32xf32> -> vector<16x32xf32>
    %237 = vector.broadcast %222 : vector<1x32xf32> to vector<16x32xf32>
    %238 = arith.addf %236, %237 : vector<16x32xf32>
    %cst_68 = arith.constant dense<0.000000e+00> : vector<16x32xf32>
    %239 = tpu.matmul %232, %212, %cst_68 {dimension_numbers = #tpu.dot_dimension_numbers<[1], [0], [0], [1], [0, 0, 1, 1], [], []>} : vector<16x32xbf16>, vector<32x32xbf16>, vector<16x32xf32> -> vector<16x32xf32>
    %240 = vector.broadcast %223 : vector<1x32xf32> to vector<16x32xf32>
    %241 = arith.addf %239, %240 : vector<16x32xf32>
    %242 = vector.extract_strided_slice %235 {offsets = [0, 0], sizes = [16, 8], strides = [1, 1]} : vector<16x32xf32> to vector<16x8xf32>
    %243 = vector.shape_cast %242 : vector<16x8xf32> to vector<2x1x8x8xf32>
    %244 = vector.extract_strided_slice %235 {offsets = [0, 8], sizes = [16, 8], strides = [1, 1]} : vector<16x32xf32> to vector<16x8xf32>
    %245 = vector.shape_cast %244 : vector<16x8xf32> to vector<2x1x8x8xf32>
    %246 = vector.extract_strided_slice %235 {offsets = [0, 16], sizes = [16, 8], strides = [1, 1]} : vector<16x32xf32> to vector<16x8xf32>
    %247 = vector.shape_cast %246 : vector<16x8xf32> to vector<2x1x8x8xf32>
    %248 = vector.extract_strided_slice %235 {offsets = [0, 24], sizes = [16, 8], strides = [1, 1]} : vector<16x32xf32> to vector<16x8xf32>
    %249 = vector.shape_cast %248 : vector<16x8xf32> to vector<2x1x8x8xf32>
    %250 = tpu.concatenate %243, %245, %247, %249 in 1 : vector<2x1x8x8xf32>, vector<2x1x8x8xf32>, vector<2x1x8x8xf32>, vector<2x1x8x8xf32> -> vector<2x4x8x8xf32>
    %251 = vector.shape_cast %250 : vector<2x4x8x8xf32> to vector<8x8x8xf32>
    %252 = arith.truncf %251 : vector<8x8x8xf32> to vector<8x8x8xbf16>
    %253 = vector.extract_strided_slice %238 {offsets = [0, 0], sizes = [16, 8], strides = [1, 1]} : vector<16x32xf32> to vector<16x8xf32>
    %254 = vector.shape_cast %253 : vector<16x8xf32> to vector<2x1x8x8xf32>
    %255 = vector.extract_strided_slice %238 {offsets = [0, 8], sizes = [16, 8], strides = [1, 1]} : vector<16x32xf32> to vector<16x8xf32>
    %256 = vector.shape_cast %255 : vector<16x8xf32> to vector<2x1x8x8xf32>
    %257 = vector.extract_strided_slice %238 {offsets = [0, 16], sizes = [16, 8], strides = [1, 1]} : vector<16x32xf32> to vector<16x8xf32>
    %258 = vector.shape_cast %257 : vector<16x8xf32> to vector<2x1x8x8xf32>
    %259 = vector.extract_strided_slice %238 {offsets = [0, 24], sizes = [16, 8], strides = [1, 1]} : vector<16x32xf32> to vector<16x8xf32>
    %260 = vector.shape_cast %259 : vector<16x8xf32> to vector<2x1x8x8xf32>
    %261 = tpu.concatenate %254, %256, %258, %260 in 1 : vector<2x1x8x8xf32>, vector<2x1x8x8xf32>, vector<2x1x8x8xf32>, vector<2x1x8x8xf32> -> vector<2x4x8x8xf32>
    %262 = vector.shape_cast %261 : vector<2x4x8x8xf32> to vector<8x8x8xf32>
    %263 = arith.truncf %262 : vector<8x8x8xf32> to vector<8x8x8xbf16>
    %264 = vector.extract_strided_slice %241 {offsets = [0, 0], sizes = [16, 8], strides = [1, 1]} : vector<16x32xf32> to vector<16x8xf32>
    %265 = vector.shape_cast %264 : vector<16x8xf32> to vector<2x1x8x8xf32>
    %266 = vector.extract_strided_slice %241 {offsets = [0, 8], sizes = [16, 8], strides = [1, 1]} : vector<16x32xf32> to vector<16x8xf32>
    %267 = vector.shape_cast %266 : vector<16x8xf32> to vector<2x1x8x8xf32>
    %268 = vector.extract_strided_slice %241 {offsets = [0, 16], sizes = [16, 8], strides = [1, 1]} : vector<16x32xf32> to vector<16x8xf32>
    %269 = vector.shape_cast %268 : vector<16x8xf32> to vector<2x1x8x8xf32>
    %270 = vector.extract_strided_slice %241 {offsets = [0, 24], sizes = [16, 8], strides = [1, 1]} : vector<16x32xf32> to vector<16x8xf32>
    %271 = vector.shape_cast %270 : vector<16x8xf32> to vector<2x1x8x8xf32>
    %272 = tpu.concatenate %265, %267, %269, %271 in 1 : vector<2x1x8x8xf32>, vector<2x1x8x8xf32>, vector<2x1x8x8xf32>, vector<2x1x8x8xf32> -> vector<2x4x8x8xf32>
    %273 = vector.shape_cast %272 : vector<2x4x8x8xf32> to vector<8x8x8xf32>
    %274 = arith.truncf %273 : vector<8x8x8xf32> to vector<8x8x8xbf16>
    "tpu.trace_start"() <{level = 10 : i32, message = "hld,hmd->hlm"}> : () -> ()
    %cst_69 = arith.constant dense<0.000000e+00> : vector<8x8x8xf32>
    %275 = tpu.matmul %252, %263, %cst_69 {dimension_numbers = #tpu.dot_dimension_numbers<[2], [2], [1], [1], [0, 0, 0, 1, 1, 1], [0], [0]>} : vector<8x8x8xbf16>, vector<8x8x8xbf16>, vector<8x8x8xf32> -> vector<8x8x8xf32>
    "tpu.trace_stop"() : () -> ()
    %276 = arith.addf %275, %12 : vector<8x8x8xf32>
    %cst_70 = arith.constant dense<0xFF800000> : vector<8x8xf32>
    %277 = vector.multi_reduction <maximumf>, %276, %cst_70 [2] : vector<8x8x8xf32> to vector<8x8xf32>
    %278 = vector.shape_cast %277 : vector<8x8xf32> to vector<8x8x1xf32>
    %279 = vector.broadcast %278 : vector<8x8x1xf32> to vector<8x8x8xf32>
    %280 = arith.subf %276, %279 : vector<8x8x8xf32>
    %281 = math.exp %280 : vector<8x8x8xf32>
    %cst_71 = arith.constant dense<0.000000e+00> : vector<8x8xf32>
    %282 = vector.multi_reduction <add>, %281, %cst_71 [2] : vector<8x8x8xf32> to vector<8x8xf32>
    %283 = vector.shape_cast %282 : vector<8x8xf32> to vector<8x8x1xf32>
    %284 = tpu.reciprocal %283 {approx = true} : vector<8x8x1xf32> -> vector<8x8x1xf32>
    %285 = vector.broadcast %284 : vector<8x8x1xf32> to vector<8x8x8xf32>
    %286 = arith.mulf %281, %285 : vector<8x8x8xf32>
    %287 = arith.truncf %286 : vector<8x8x8xf32> to vector<8x8x8xbf16>
    "tpu.trace_start"() <{level = 10 : i32, message = "hlm,hmd->hld"}> : () -> ()
    %cst_72 = arith.constant dense<0.000000e+00> : vector<8x8x8xf32>
    %288 = tpu.matmul %287, %274, %cst_72 {dimension_numbers = #tpu.dot_dimension_numbers<[2], [1], [1], [2], [0, 0, 0, 1, 1, 2], [0], [0]>} : vector<8x8x8xbf16>, vector<8x8x8xbf16>, vector<8x8x8xf32> -> vector<8x8x8xf32>
    "tpu.trace_stop"() : () -> ()
    %289 = vector.shape_cast %288 : vector<8x8x8xf32> to vector<2x4x8x8xf32>
    %290 = vector.extract_strided_slice %289 {offsets = [0, 0, 0, 0], sizes = [2, 1, 8, 8], strides = [1, 1, 1, 1]} : vector<2x4x8x8xf32> to vector<2x1x8x8xf32>
    %291 = vector.shape_cast %290 : vector<2x1x8x8xf32> to vector<2x8x8xf32>
    %292 = vector.shape_cast %291 : vector<2x8x8xf32> to vector<16x8xf32>
    %293 = vector.extract_strided_slice %289 {offsets = [0, 1, 0, 0], sizes = [2, 1, 8, 8], strides = [1, 1, 1, 1]} : vector<2x4x8x8xf32> to vector<2x1x8x8xf32>
    %294 = vector.shape_cast %293 : vector<2x1x8x8xf32> to vector<2x8x8xf32>
    %295 = vector.shape_cast %294 : vector<2x8x8xf32> to vector<16x8xf32>
    %296 = vector.extract_strided_slice %289 {offsets = [0, 2, 0, 0], sizes = [2, 1, 8, 8], strides = [1, 1, 1, 1]} : vector<2x4x8x8xf32> to vector<2x1x8x8xf32>
    %297 = vector.shape_cast %296 : vector<2x1x8x8xf32> to vector<2x8x8xf32>
    %298 = vector.shape_cast %297 : vector<2x8x8xf32> to vector<16x8xf32>
    %299 = vector.extract_strided_slice %289 {offsets = [0, 3, 0, 0], sizes = [2, 1, 8, 8], strides = [1, 1, 1, 1]} : vector<2x4x8x8xf32> to vector<2x1x8x8xf32>
    %300 = vector.shape_cast %299 : vector<2x1x8x8xf32> to vector<2x8x8xf32>
    %301 = vector.shape_cast %300 : vector<2x8x8xf32> to vector<16x8xf32>
    %302 = tpu.concatenate %292, %295, %298, %301 in 1 : vector<16x8xf32>, vector<16x8xf32>, vector<16x8xf32>, vector<16x8xf32> -> vector<16x32xf32>
    %303 = arith.truncf %302 : vector<16x32xf32> to vector<16x32xbf16>
    %cst_73 = arith.constant dense<0.000000e+00> : vector<16x32xf32>
    %304 = tpu.matmul %303, %214, %cst_73 {dimension_numbers = #tpu.dot_dimension_numbers<[1], [0], [0], [1], [0, 0, 1, 1], [], []>} : vector<16x32xbf16>, vector<32x32xbf16>, vector<16x32xf32> -> vector<16x32xf32>
    %305 = vector.broadcast %224 : vector<1x32xf32> to vector<16x32xf32>
    %306 = arith.addf %304, %305 : vector<16x32xf32>
    %307 = arith.addf %306, %204 : vector<16x32xf32>
    %cst_74 = arith.constant dense<0.000000e+00> : vector<16xf32>
    %308 = vector.multi_reduction <add>, %307, %cst_74 [1] : vector<16x32xf32> to vector<16xf32>
    %309 = vector.shape_cast %308 : vector<16xf32> to vector<16x1xf32>
    %cst_75 = arith.constant 3.200000e+01 : f32
    %310 = vector.broadcast %cst_75 : f32 to vector<16x1xf32>
    %311 = arith.divf %309, %310 : vector<16x1xf32>
    %312 = vector.broadcast %311 : vector<16x1xf32> to vector<16x32xf32>
    %313 = arith.subf %307, %312 : vector<16x32xf32>
    %314 = arith.mulf %313, %313 : vector<16x32xf32>
    %cst_76 = arith.constant dense<0.000000e+00> : vector<16xf32>
    %315 = vector.multi_reduction <add>, %314, %cst_76 [1] : vector<16x32xf32> to vector<16xf32>
    %316 = vector.shape_cast %315 : vector<16xf32> to vector<16x1xf32>
    %cst_77 = arith.constant 3.200000e+01 : f32
    %317 = vector.broadcast %cst_77 : f32 to vector<16x1xf32>
    %318 = arith.divf %316, %317 : vector<16x1xf32>
    %319 = vector.broadcast %311 : vector<16x1xf32> to vector<16x32xf32>
    %320 = arith.subf %307, %319 : vector<16x32xf32>
    %cst_78 = arith.constant 9.99999996E-13 : f32
    %321 = vector.broadcast %cst_78 : f32 to vector<16x1xf32>
    %322 = arith.addf %318, %321 : vector<16x1xf32>
    %323 = math.rsqrt %322 : vector<16x1xf32>
    %324 = vector.broadcast %323 : vector<16x1xf32> to vector<16x32xf32>
    %325 = arith.mulf %320, %324 : vector<16x32xf32>
    %326 = vector.broadcast %225 : vector<1x32xf32> to vector<16x32xf32>
    %327 = arith.mulf %325, %326 : vector<16x32xf32>
    %328 = vector.broadcast %226 : vector<1x32xf32> to vector<16x32xf32>
    %329 = arith.addf %327, %328 : vector<16x32xf32>
    %330 = arith.truncf %329 : vector<16x32xf32> to vector<16x32xbf16>
    %cst_79 = arith.constant dense<0.000000e+00> : vector<16x128xf32>
    %331 = tpu.matmul %330, %216, %cst_79 {dimension_numbers = #tpu.dot_dimension_numbers<[1], [0], [0], [1], [0, 0, 1, 1], [], []>} : vector<16x32xbf16>, vector<32x128xbf16>, vector<16x128xf32> -> vector<16x128xf32>
    %332 = vector.broadcast %231 : vector<1x128xf32> to vector<16x128xf32>
    %333 = arith.addf %331, %332 : vector<16x128xf32>
    %cst_80 = arith.constant 5.000000e-01 : f32
    %334 = vector.broadcast %cst_80 : f32 to vector<16x128xf32>
    %335 = arith.mulf %334, %333 : vector<16x128xf32>
    %cst_81 = arith.constant 4.471500e-02 : f32
    %336 = vector.broadcast %cst_81 : f32 to vector<16x128xf32>
    %337 = arith.mulf %336, %333 : vector<16x128xf32>
    %338 = arith.mulf %337, %333 : vector<16x128xf32>
    %339 = arith.mulf %338, %333 : vector<16x128xf32>
    %340 = arith.addf %333, %339 : vector<16x128xf32>
    %cst_82 = arith.constant 0.797884583 : f32
    %341 = vector.broadcast %cst_82 : f32 to vector<16x128xf32>
    %342 = arith.mulf %341, %340 : vector<16x128xf32>
    %343 = math.tanh %342 : vector<16x128xf32>
    %cst_83 = arith.constant 1.000000e+00 : f32
    %344 = vector.broadcast %cst_83 : f32 to vector<16x128xf32>
    %345 = arith.addf %344, %343 : vector<16x128xf32>
    %346 = arith.mulf %335, %345 : vector<16x128xf32>
    %347 = arith.truncf %346 : vector<16x128xf32> to vector<16x128xbf16>
    %cst_84 = arith.constant dense<0.000000e+00> : vector<16x32xf32>
    %348 = tpu.matmul %347, %218, %cst_84 {dimension_numbers = #tpu.dot_dimension_numbers<[1], [0], [0], [1], [0, 0, 1, 1], [], []>} : vector<16x128xbf16>, vector<128x32xbf16>, vector<16x32xf32> -> vector<16x32xf32>
    %349 = vector.broadcast %227 : vector<1x32xf32> to vector<16x32xf32>
    %350 = arith.addf %348, %349 : vector<16x32xf32>
    %351 = arith.addf %350, %329 : vector<16x32xf32>
    %cst_85 = arith.constant dense<0.000000e+00> : vector<16xf32>
    %352 = vector.multi_reduction <add>, %351, %cst_85 [1] : vector<16x32xf32> to vector<16xf32>
    %353 = vector.shape_cast %352 : vector<16xf32> to vector<16x1xf32>
    %cst_86 = arith.constant 3.200000e+01 : f32
    %354 = vector.broadcast %cst_86 : f32 to vector<16x1xf32>
    %355 = arith.divf %353, %354 : vector<16x1xf32>
    %356 = vector.broadcast %355 : vector<16x1xf32> to vector<16x32xf32>
    %357 = arith.subf %351, %356 : vector<16x32xf32>
    %358 = arith.mulf %357, %357 : vector<16x32xf32>
    %cst_87 = arith.constant dense<0.000000e+00> : vector<16xf32>
    %359 = vector.multi_reduction <add>, %358, %cst_87 [1] : vector<16x32xf32> to vector<16xf32>
    %360 = vector.shape_cast %359 : vector<16xf32> to vector<16x1xf32>
    %cst_88 = arith.constant 3.200000e+01 : f32
    %361 = vector.broadcast %cst_88 : f32 to vector<16x1xf32>
    %362 = arith.divf %360, %361 : vector<16x1xf32>
    %363 = vector.broadcast %355 : vector<16x1xf32> to vector<16x32xf32>
    %364 = arith.subf %351, %363 : vector<16x32xf32>
    %cst_89 = arith.constant 9.99999996E-13 : f32
    %365 = vector.broadcast %cst_89 : f32 to vector<16x1xf32>
    %366 = arith.addf %362, %365 : vector<16x1xf32>
    %367 = math.rsqrt %366 : vector<16x1xf32>
    %368 = vector.broadcast %367 : vector<16x1xf32> to vector<16x32xf32>
    %369 = arith.mulf %364, %368 : vector<16x32xf32>
    %370 = vector.broadcast %228 : vector<1x32xf32> to vector<16x32xf32>
    %371 = arith.mulf %369, %370 : vector<16x32xf32>
    %372 = vector.broadcast %229 : vector<1x32xf32> to vector<16x32xf32>
    %373 = arith.addf %371, %372 : vector<16x32xf32>
    %374 = vector.shape_cast %373 : vector<16x32xf32> to vector<2x8x32xf32>
    %375 = vector.extract_strided_slice %374 {offsets = [0, 0, 0], sizes = [2, 1, 32], strides = [1, 1, 1]} : vector<2x8x32xf32> to vector<2x1x32xf32>
    %376 = vector.shape_cast %375 : vector<2x1x32xf32> to vector<2x32xf32>
    %cst_90 = arith.constant 0.000000e+00 : f32
    %377 = vector.broadcast %cst_90 : f32 to vector<6x32xf32>
    %378 = tpu.concatenate %376, %377 in 0 : vector<2x32xf32>, vector<6x32xf32> -> vector<8x32xf32>
    %379 = arith.truncf %378 : vector<8x32xf32> to vector<8x32xbf16>
    %c0_91 = arith.constant 0 : index
    %c0_92 = arith.constant 0 : index
    %380 = vector.load %arg8[%c0_91, %c0_92] : memref<32x32xbf16, #tpu.memory_space<vmem>>, vector<32x32xbf16>
    %cst_93 = arith.constant dense<0.000000e+00> : vector<8x32xf32>
    %381 = tpu.matmul %379, %380, %cst_93 {dimension_numbers = #tpu.dot_dimension_numbers<[1], [0], [0], [1], [0, 0, 1, 1], [], []>} : vector<8x32xbf16>, vector<32x32xbf16>, vector<8x32xf32> -> vector<8x32xf32>
    %382 = vector.broadcast %3 : vector<1x32xf32> to vector<8x32xf32>
    %383 = arith.addf %381, %382 : vector<8x32xf32>
    %cst_94 = arith.constant 0.000000e+00 : f32
    %384 = vector.broadcast %cst_94 : f32 to vector<8x32xf32>
    %385 = arith.maximumf %383, %384 : vector<8x32xf32>
    %386 = arith.truncf %385 : vector<8x32xf32> to vector<8x32xbf16>
    %c0_95 = arith.constant 0 : index
    %c0_96 = arith.constant 0 : index
    %387 = vector.load %arg9[%c0_95, %c0_96] : memref<32x128xbf16, #tpu.memory_space<vmem>>, vector<32x128xbf16>
    %cst_97 = arith.constant dense<0.000000e+00> : vector<8x128xf32>
    %388 = tpu.matmul %386, %387, %cst_97 {dimension_numbers = #tpu.dot_dimension_numbers<[1], [0], [0], [1], [0, 0, 1, 1], [], []>} : vector<8x32xbf16>, vector<32x128xbf16>, vector<8x128xf32> -> vector<8x128xf32>
    %c0_98 = arith.constant 0 : index
    %c0_99 = arith.constant 0 : index
    %389 = vector.load %arg10[%c0_98, %c0_99] : memref<1x128xf32, #tpu.memory_space<vmem>>, vector<1x128xf32>
    %390 = vector.broadcast %389 : vector<1x128xf32> to vector<8x128xf32>
    %391 = arith.addf %388, %390 : vector<8x128xf32>
    %c0_100 = arith.constant 0 : index
    %c0_101 = arith.constant 0 : index
    %392 = vector.load %arg11[%c0_100, %c0_101] : memref<8x128xf32, #tpu.memory_space<vmem>>, vector<8x128xf32>
    tpu.vector_store %arg11[%c0_100, %c0_101], %391 {strides = array<i32>} : memref<8x128xf32, #tpu.memory_space<vmem>>, vector<8x128xf32>,
    return
  }
}

</mosaic_0001>

<bundles_post_ra>
// kernel: forward.1
= control target key start
LH: loop header
LB: loop body
LE: loop exit
PB: predicated region body
PF: predicated region fallthrough
CT: control target
= control target key end

     0   :  { %vm78_vm0 = vcmask 261120   ;;  %v3972_v15 = vmov 0.0   ;;  %vm3973_vm1 = vmmov 0   ;;  %v47_v23 = vlaneseq  ;;  %s3974_s17 = smov 120   ;;  %s3975_s18 = smov 112   ;;  %s4764_s0 = inlined_call_operand.vmem [shape: f32[16,32], index: 0, kind: input, shape index: {}]   ;;  %s4765_s3 = inlined_call_operand.vmem [shape: bf16[2,4,32,32], index: 3, kind: input, shape index: {}]   ;;  %s4766_s2 = inlined_call_operand.vmem [shape: f32[3,32], index: 2, kind: input, shape index: {}]   ;;  %s4767_s6 = inlined_call_operand.vmem [shape: f32[2,9,32], index: 6, kind: input, shape index: {}]   ;;  %s4768_s1 = inlined_call_operand.vmem [shape: f32[2,8], index: 1, kind: input, shape index: {}]   ;;  %s4769_s4 = inlined_call_operand.vmem [shape: bf16[2,32,128], index: 4, kind: input, shape index: {}]   ;;  %s4770_s5 = inlined_call_operand.vmem [shape: bf16[2,128,32], index: 5, kind: input, shape index: {}]   ;;  %s4771_s7 = inlined_call_operand.vmem [shape: f32[2,1,128], index: 7, kind: input, shape index: {}]   ;;  %s4772_s8 = inlined_call_operand.vmem [shape: bf16[32,32], index: 8, kind: input, shape index: {}]   ;;  %s4773_s9 = inlined_call_operand.vmem [shape: bf16[32,128], index: 9, kind: input, shape index: {}]   ;;  %s4774_s10 = inlined_call_operand.vmem [shape: f32[1,128], index: 10, kind: input, shape index: {}]   ;;  %s4775_s11 = inlined_call_operand.vmem [shape: f32[8,128], index: 11, kind: output, shape index: {}]  }
   0x1   :  { %v76_v0 = vld [vmem:[%s4764_s0] sm:$0xff]  ;;  %v77_v1 = vld [vmem:[%s4764_s0 + $0x8] sm:$0xff]  ;;  %3470 = vmatprep.subr.bf16.mxu1 %v3972_v15  ;;  %3486 = vmatprep.subr.bf16.mxu0 %v3972_v15  ;;  %v3841_v40 = vld [vmem:[%s4765_s3 + $0x10] sm:$0xff]   ;;  %vm416_vm2 = vcmask 64512   ;;  %s3976_s19 = smov 104   ;;  %vm884_vm3 = vcmask 1043456  }
   0x2   :  { %v79_v2 = vsel %vm78_vm0, %v76_v0, 0.0  ;;  %v82_v3 = vsel %vm78_vm0, %v77_v1, 0.0  ;;  %v3837_v14 = vld [vmem:[%s4765_s3] sm:$0xff]   ;;  %v3839_v17 = vld [vmem:[%s4765_s3 + $0x8] sm:$0xff]   ;;  %3474 = vmatprep.mubr.msk.bf16.mxu1 %vm3973_vm1, %v3972_v15  ;;  %3490 = vmatprep.mubr.msk.bf16.mxu0 %vm3973_vm1, %v3972_v15  ;;  %v4073_v26 = vshrl.u32 %v47_v23, 7  ;;  %v3842_v42 = vld [vmem:[%s4765_s3 + $0x18] sm:$0xff]  }
   0x3   :  { %80 = vadd.xlane.f32.xlu0 %v79_v2  ;;  %v3838_v16 = vld [vmem:[%s4765_s3 + $0x20] sm:$0xff]   ;;  %3471 = vmatpush3.bf16.msra.mxu1 %v3837_v14  ;;  %v3840_v18 = vld [vmem:[%s4765_s3 + $0x28] sm:$0xff]   ;;  %s3978_s24 = smov 8   ;;  %s3979_s25 = smov 16   ;;  %vm1276_vm4 = vcmask 130048   ;;  %vm1279_vm5 = vcmask 195584  }
   0x4   :  { %3487 = vmatpush3.bf16.msra.mxu0 %v3838_v16  ;;  %3472 = vmatprep.subr.bf16.mxu1 %v3972_v15  ;;  %v4076_v27 = vsub.s32 0, %v4073_v26  ;;  %v39_v28 = vld [vmem:[%s4766_s2] sm:$0x7]  ;;  %v4083_v32 = vsub.s32 1, %v4073_v26  ;;  %v4117_v45 = vsub.s32 2, %v4073_v26  ;;  %s3980_s26 = smov 24  }
   0x5   :  { %3488 = vmatprep.subr.bf16.mxu0 %v3972_v15  ;;  %v4112_v43 = vld [vmem:[%s4767_s6] sm:$0xff]  ;;  %vm3082_vm6 = vcmask 1041409   ;;  %vm3085_vm7 = vcmask 1041408  }
   0x6   :  { %v109_v31 = vrot.slane %v39_v28, %v4076_v27  ;;  %v115_v36 = vrot.slane %v39_v28, %v4083_v32  ;;  %v161_v44 = vrot.slane %v4112_v43, %v4076_v27  ;;  %v4123_v49 = vrot.slane %v4112_v43, %v4117_v45 }
   0x7   :  { %83 = vadd.xlane.f32.xlu0 %v82_v3  ;;  %3473 = vmatpush3.bf16.msra.mxu1 %v3839_v17  ;;  %v221_v57 = vrot.slane %v4112_v43, %v4083_v32 }
   0x8   :  { %3489 = vmatpush3.bf16.msra.mxu0 %v3840_v18  ;;  %3478 = vmatprep.subr.bf16.mxu1 %v3972_v15 }
   0x9   :  { %3500 = vmatprep.subr.bf16.mxu0 %v3972_v15 }
  0x90   :  { %v81_v4 = vpop.xlane.xlu0 %80 }
  0x91   :  { %v86_v5 = vmul.f32 0.03125, %v81_v4 }
  0x93   :  { %v88_v6 = vsub.f32 %v76_v0, %v86_v5 }
  0x94   :  { %v84_v7 = vpop.xlane.xlu0 %83 }
  0x95   :  { %v87_v8 = vmul.f32 0.03125, %v84_v7  ;;  %v90_v9 = vmul.f32 %v88_v6, %v88_v6 }
  0x97   :  { %v89_v10 = vsub.f32 %v77_v1, %v87_v8  ;;  %v92_v11 = vsel %vm78_vm0, %v90_v9, 0.0 }
  0x98   :  { %93 = vadd.xlane.f32.xlu1 %v92_v11 }
  0x99   :  { %v91_v12 = vmul.f32 %v89_v10, %v89_v10 }
  0x9b   :  { %v95_v13 = vsel %vm78_vm0, %v91_v12, 0.0 }
  0x9c   :  { %96 = vadd.xlane.f32.xlu1 %v95_v13 }
 0x125   :  { %v94_v19 = vpop.xlane.xlu1 %93 }
 0x126   :  { %v98_v20 = vmul.f32 0.03125, %v94_v19 }
 0x128   :  { %v100_v21 = vadd.f32 1e-12, %v98_v20 }
 0x129   :  { %v97_v22 = vpop.xlane.xlu1 %96 }
 0x12a   :  { %3877 = vrsqrt.f32 %v100_v21  ;;  %v99_v24 = vmul.f32 0.03125, %v97_v22 }
 0x12c   :  { %v101_v25 = vadd.f32 1e-12, %v99_v24 }
 0x12e   :  { %3879 = vrsqrt.f32 %v101_v25 }
 0x134   :  { %v3878_v29 = vpop.eup %3877 }
 0x135   :  { %v104_v30 = vmul.f32 %v3878_v29, %v88_v6 }
 0x137   :  { %v110_v35 = vmul.f32 %v109_v31, %v104_v30 }
 0x138   :  { %v3880_v33 = vpop.eup %3879 }
 0x139   :  { %v105_v34 = vmul.f32 %v3880_v33, %v89_v10  ;;  %v4086_v38 = vadd.f32 %v115_v36, %v110_v35 }
 0x13b   :  { %v111_v37 = vmul.f32 %v109_v31, %v105_v34 }
 0x13d   :  { %v4088_v39 = vadd.f32 %v115_v36, %v111_v37 }
 0x13f   :  { %v157_v41 = vpack.c.bf16 %v4088_v39, %v4086_v38 }
 0x141   :  { %3475 = vmatmul.mubr.msk.bf16.vlgmr.msra.gmra.mrb[0].mxu1 %vm78_vm0, %v157_v41  ;;  %3491 = vmatmul.mubr.msk.bf16.vlgmr.msra.gmra.mrb[0].mxu0 %vm78_vm0, %v157_v41 }
 0x142   :  { %3479 = vmatpush3.bf16.msra.mxu1 %v3841_v40  ;;  %3482 = vmatprep.mubr.msk.bf16.mxu1 %vm3973_vm1, %v3972_v15 }
 0x143   :  { %3480 = vmatprep.subr.bf16.mxu1 %v3972_v15  ;;  %3502 = vmatprep.mubr.msk.bf16.mxu0 %vm3973_vm1, %v3972_v15 }
 0x146   :  { %3481 = vmatpush3.bf16.msra.mxu1 %v3842_v42 }
 0x147   :  { %3494 = vmatprep.subr.bf16.mxu1 %v3972_v15 }
 0x149   :  { %3483 = vmatmul.mubr.msk.bf16.vlgmr.msra.gmra.mrb[4].mxu1 %vm78_vm0, %v157_v41 }
 0x14a   :  { %3496 = vmatprep.mubr.msk.bf16.mxu1 %vm3973_vm1, %v3972_v15 }
 0x214   :  { %v211_v46 = vpop.f32.mrb[0].mxu1  ;;  %v4119_v47 = vpop.f32.mrb[0].mxu0 }
 0x215   :  { %v212_v48 = vadd.f32 %v211_v46, %v161_v44  ;;  %v3476_v50 = vpop.f32.mrb[1].mxu1  ;;  %v3492_v51 = vpop.f32.mrb[1].mxu0  ;;  %v4163_v30 = vadd.f32 %v4119_v47, %v4123_v49 }
 0x216   :  { %v214_v52 = vpop.f32.mrb[2].mxu1  ;;  %v328_v53 = vpop.f32.mrb[2].mxu0  ;;  %v40_v50 = vld [vmem:[%s4768_s1] sm:$0x3] }
 0x217   :  { %v4126_v54 = vadd.f32 %v328_v53, %v4123_v49  ;;  %v3493_v55 = vpop.f32.mrb[3].mxu0  ;;  %334 = vrot.lane.b32.xlu1 %v212_v48, %s3974_s17  ;;  %v3477_v56 = vpop.f32.mrb[3].mxu1  ;;  %v352_v2 = vpack.c.bf16 %v212_v48, %v212_v48  ;;  %v215_v3 = vadd.f32 %v214_v52, %v161_v44  ;;  %v408_v37 = vpack.c.bf16 %v4163_v30, %v4163_v30 }
 0x218   :  { %v41_v51 = vsub.f32 1.0, %v40_v50 }
 0x219   :  { %v356_v28 = vpack.c.bf16 %v215_v3, %v215_v3  ;;  %v886_v44 = vsel %vm884_vm3, %v408_v37, 0 }
 0x21a   :  { %v42_v53 = vmul.f32 -1e+09, %v41_v51 }
 0x21c   :  { %v268_v58 = vpop.f32.mrb[4].mxu1 }
 0x21d   :  { %v269_v59 = vadd.f32 %v268_v58, %v221_v57  ;;  %v3484_v60 = vpop.f32.mrb[5].mxu1 }
 0x21e   :  { %v271_v61 = vpop.f32.mrb[6].mxu1 }
 0x21f   :  { %368 = vrot.lane.b32.xlu1 %v269_v59, %s3975_s18  ;;  %362 = vrot.lane.b32.xlu0 %v269_v59, %s3974_s17  ;;  %v3485_v62 = vpop.f32.mrb[7].mxu1  ;;  %v380_v63 = vpack.c.bf16 %v269_v59, %v269_v59  ;;  %v272_v1 = vadd.f32 %v271_v61, %v221_v57 }
 0x221   :  { %v421_v0 = vsel %vm416_vm2, %v380_v63, 0  ;;  %v384_v14 = vpack.c.bf16 %v272_v1, %v272_v1 }
 0x222   :  { %3495 = vmatpush3.bf16.xpose.msra.mxu1 %v421_v0 }
 0x223   :  { %374 = vrot.lane.b32.xlu1 %v269_v59, %s3976_s19  ;;  %340 = vrot.lane.b32.xlu0 %v212_v48, %s3975_s18  ;;  %v605_v21 = vsel %vm416_vm2, %v384_v14, 0 }
 0x224   :  { %3506 = vmatprep.subr.bf16.mxu1 %v3972_v15 }
 0x227   :  { %346 = vrot.lane.b32.xlu1 %v212_v48, %s3976_s19  ;;  %364 = vrot.lane.b32.xlu0 %v272_v1, %s3974_s17  ;;  %v3977_v48 = vmov 1966171168  }
 0x228   :  { %v45_v49 = vunpack.c.l.s4 %v3977_v48 }
 0x229   :  { %3497 = vmatmul.mubr.msk.bf16.vlgmr.msra.gmra.mrb[8].mxu1 %vm416_vm2, %v352_v2 }
 0x22a   :  { %3508 = vmatprep.mubr.msk.bf16.mxu1 %vm3973_vm1, %v3972_v15  ;;  %v46_v52 = vunpack.c.0.s8 %v45_v49 }
 0x22b   :  { %370 = vrot.lane.b32.xlu1 %v272_v1, %s3975_s18  ;;  %336 = vrot.lane.b32.xlu0 %v215_v3, %s3974_s17 }
 0x22c   :  { %v49_v55 = vsub.s32 %v46_v52, %v4073_v26 }
 0x22e   :  { %v50_v56 = vrot.slane %v42_v53, %v49_v55 }
 0x22f   :  { %376 = vrot.lane.b32.xlu1 %v272_v1, %s3976_s19  ;;  %342 = vrot.lane.b32.xlu0 %v215_v3, %s3975_s18 }
 0x230   :  { %v58_v57 = vrot.slane %v50_v56, %v49_v55  ;;  %v51_v1 = vcombine.high %v50_v56, %v50_v56 }
 0x232   :  { %v4195_v58 = vrot.slane %v58_v57, %v4076_v27  ;;  %v65_v14 = vrot.slane %v51_v1, %v49_v55 }
 0x233   :  { %348 = vrot.lane.b32.xlu1 %v215_v3, %s3976_s19 }
 0x289   :  { %v335_v4 = vpop.permute.xlu1 %334 }
 0x28a   :  { %v353_v17 = vpack.c.bf16 %v335_v4, %v335_v4 }
 0x291   :  { %v369_v5 = vpop.permute.xlu1 %368  ;;  %v363_v6 = vpop.permute.xlu0 %362 }
 0x292   :  { %v382_v7 = vpack.c.bf16 %v369_v5, %v369_v5  ;;  %v381_v8 = vpack.c.bf16 %v363_v6, %v363_v6 }
 0x294   :  { %v513_v9 = vsel %vm416_vm2, %v382_v7, 0  ;;  %v467_v10 = vsel %vm416_vm2, %v381_v8, 0 }
 0x295   :  { %v375_v11 = vpop.permute.xlu1 %374  ;;  %3501 = vmatpush3.bf16.xpose.msra.mxu0 %v467_v10  ;;  %v341_v12 = vpop.permute.xlu0 %340  ;;  %3507 = vmatpush3.bf16.xpose.msra.mxu1 %v513_v9 }
 0x296   :  { %3512 = vmatprep.subr.bf16.mxu0 %v3972_v15  ;;  %3518 = vmatprep.subr.bf16.mxu1 %v3972_v15  ;;  %v383_v13 = vpack.c.bf16 %v375_v11, %v375_v11  ;;  %v354_v18 = vpack.c.bf16 %v341_v12, %v341_v12 }
 0x298   :  { %v559_v20 = vsel %vm416_vm2, %v383_v13, 0 }
 0x299   :  { %v347_v16 = vpop.permute.xlu1 %346  ;;  %v365_v19 = vpop.permute.xlu0 %364 }
 0x29a   :  { %v385_v23 = vpack.c.bf16 %v365_v19, %v365_v19  ;;  %v355_v29 = vpack.c.bf16 %v347_v16, %v347_v16  ;;  %v4204_v16 = vrot.slane %v65_v14, %v4076_v27 }
 0x29c   :  { %3503 = vmatmul.mubr.msk.bf16.vlgmr.msra.gmra.mrb[4].mxu0 %vm416_vm2, %v353_v17  ;;  %3509 = vmatmul.mubr.msk.bf16.vlgmr.msra.gmra.mrb[12].mxu1 %vm416_vm2, %v354_v18  ;;  %v651_v31 = vsel %vm416_vm2, %v385_v23, 0 }
 0x29d   :  { %3513 = vmatpush3.bf16.xpose.msra.mxu0 %v559_v20  ;;  %v371_v22 = vpop.permute.xlu1 %370  ;;  %3519 = vmatpush3.bf16.xpose.msra.mxu1 %v605_v21  ;;  %v337_v25 = vpop.permute.xlu0 %336 }
 0x29e   :  { %3514 = vmatprep.mubr.msk.bf16.mxu0 %vm3973_vm1, %v3972_v15  ;;  %3520 = vmatprep.mubr.msk.bf16.mxu1 %vm3973_vm1, %v3972_v15  ;;  %v386_v24 = vpack.c.bf16 %v371_v22, %v371_v22  ;;  %v357_v40 = vpack.c.bf16 %v337_v25, %v337_v25 }
 0x29f   :  { %3524 = vmatprep.subr.bf16.mxu0 %v3972_v15  ;;  %3530 = vmatprep.subr.bf16.mxu1 %v3972_v15 }
 0x2a0   :  { %v697_v33 = vsel %vm416_vm2, %v386_v24, 0 }
 0x2a1   :  { %v377_v34 = vpop.permute.xlu1 %376  ;;  %v343_v35 = vpop.permute.xlu0 %342 }
 0x2a2   :  { %v387_v36 = vpack.c.bf16 %v377_v34, %v377_v34  ;;  %v358_v41 = vpack.c.bf16 %v343_v35, %v343_v35 }
 0x2a4   :  { %3515 = vmatmul.mubr.msk.bf16.vlgmr.msra.gmra.mrb[8].mxu0 %vm416_vm2, %v355_v29  ;;  %3521 = vmatmul.mubr.msk.bf16.vlgmr.msra.gmra.mrb[16].mxu1 %vm416_vm2, %v356_v28  ;;  %v743_v42 = vsel %vm416_vm2, %v387_v36, 0 }
 0x2a5   :  { %3525 = vmatpush3.bf16.xpose.msra.mxu0 %v651_v31  ;;  %3531 = vmatpush3.bf16.xpose.msra.mxu1 %v697_v33  ;;  %v349_v46 = vpop.permute.xlu1 %348 }
 0x2a6   :  { %3526 = vmatprep.mubr.msk.bf16.mxu0 %vm3973_vm1, %v3972_v15  ;;  %3532 = vmatprep.mubr.msk.bf16.mxu1 %vm3973_vm1, %v3972_v15  ;;  %v359_v47 = vpack.c.bf16 %v349_v46, %v349_v46 }
 0x2a7   :  { %3536 = vmatprep.subr.bf16.mxu0 %v3972_v15  ;;  %3542 = vmatprep.subr.bf16.mxu1 %v3972_v15 }
 0x2ac   :  { %3527 = vmatmul.mubr.msk.bf16.vlgmr.msra.gmra.mrb[12].mxu0 %vm416_vm2, %v357_v40  ;;  %3533 = vmatmul.mubr.msk.bf16.vlgmr.msra.gmra.mrb[20].mxu1 %vm416_vm2, %v358_v41 }
 0x2ad   :  { %3537 = vmatpush3.bf16.xpose.msra.mxu0 %v743_v42  ;;  %3543 = vmatpush3.bf16.msra.mxu1 %v886_v44 }
 0x2ae   :  { %3538 = vmatprep.mubr.msk.bf16.mxu0 %vm3973_vm1, %v3972_v15  ;;  %3548 = vmatprep.subr.bf16.mxu0 %v3972_v15 }
 0x2af   :  { %3544 = vmatprep.mubr.msk.bf16.mxu1 %vm3973_vm1, %v3972_v15  ;;  %3554 = vmatprep.subr.bf16.mxu1 %v3972_v15 }
 0x2b4   :  { %3539 = vmatmul.mubr.msk.bf16.vlgmr.msra.gmra.mrb[16].mxu0 %vm416_vm2, %v359_v47 }
 0x2b5   :  { %3550 = vmatprep.mubr.msk.bf16.mxu0 %vm3973_vm1, %v3972_v15 }
 0x2fc   :  { %v457_v59 = vpop.f32.mrb[8].mxu1 }
 0x2fd   :  { %v458_v60 = vadd.f32 %v457_v59, %v4195_v58  ;;  %v3498_v61 = vpop.f32.mrb[9].mxu1 }
 0x2fe   :  { %v460_v62 = vpop.f32.mrb[10].mxu1 }
 0x2ff   :  { %v3499_v63 = vpop.f32.mrb[11].mxu1  ;;  %v785_v0 = vsel %vm416_vm2, %v458_v60, -inf }
 0x300   :  { %786 = vmax.xlane.f32.xlu0 %v785_v0 }
 0x36f   :  { %v503_v2 = vpop.f32.mrb[4].mxu0  ;;  %v549_v3 = vpop.f32.mrb[12].mxu1 }
 0x370   :  { %v504_v4 = vadd.f32 %v503_v2, %v4195_v58  ;;  %v550_v5 = vadd.f32 %v549_v3, %v4195_v58  ;;  %v3504_v6 = vpop.f32.mrb[5].mxu0  ;;  %v3510_v7 = vpop.f32.mrb[13].mxu1 }
 0x371   :  { %v506_v8 = vpop.f32.mrb[6].mxu0  ;;  %v552_v9 = vpop.f32.mrb[14].mxu1 }
 0x372   :  { %v3505_v10 = vpop.f32.mrb[7].mxu0  ;;  %v3511_v11 = vpop.f32.mrb[15].mxu1  ;;  %v788_v12 = vsel %vm416_vm2, %v504_v4, -inf  ;;  %v791_v13 = vsel %vm416_vm2, %v550_v5, -inf }
 0x373   :  { %789 = vmax.xlane.f32.xlu1 %v788_v12  ;;  %792 = vmax.xlane.f32.xlu0 %v791_v13 }
 0x377   :  { %v595_v17 = vpop.f32.mrb[8].mxu0  ;;  %v641_v18 = vpop.f32.mrb[16].mxu1 }
 0x378   :  { %v4207_v19 = vadd.f32 %v595_v17, %v4195_v58  ;;  %v3516_v20 = vpop.f32.mrb[9].mxu0  ;;  %v3522_v21 = vpop.f32.mrb[17].mxu1  ;;  %v4210_v24 = vadd.f32 %v641_v18, %v4204_v16 }
 0x379   :  { %v598_v22 = vpop.f32.mrb[10].mxu0  ;;  %v644_v23 = vpop.f32.mrb[18].mxu1 }
 0x37a   :  { %v3517_v25 = vpop.f32.mrb[11].mxu0  ;;  %v3523_v28 = vpop.f32.mrb[19].mxu1  ;;  %v794_v29 = vsel %vm416_vm2, %v4207_v19, -inf  ;;  %v797_v31 = vsel %vm416_vm2, %v4210_v24, -inf }
 0x37b   :  { %795 = vmax.xlane.f32.xlu0 %v794_v29 }
 0x37f   :  { %v687_v33 = vpop.f32.mrb[12].mxu0  ;;  %798 = vmax.xlane.f32.xlu0 %v797_v31  ;;  %v733_v34 = vpop.f32.mrb[20].mxu1 }
 0x380   :  { %v688_v35 = vadd.f32 %v687_v33, %v4204_v16  ;;  %v4218_v36 = vadd.f32 %v733_v34, %v4204_v16  ;;  %v3528_v37 = vpop.f32.mrb[13].mxu0  ;;  %v3534_v40 = vpop.f32.mrb[21].mxu1 }
 0x381   :  { %v690_v41 = vpop.f32.mrb[14].mxu0  ;;  %v736_v42 = vpop.f32.mrb[22].mxu1 }
 0x382   :  { %v3529_v44 = vpop.f32.mrb[15].mxu0  ;;  %v3535_v46 = vpop.f32.mrb[23].mxu1  ;;  %v800_v47 = vsel %vm416_vm2, %v688_v35, -inf  ;;  %v803_v48 = vsel %vm416_vm2, %v4218_v36, -inf }
 0x383   :  { %801 = vmax.xlane.f32.xlu1 %v800_v47  ;;  %804 = vmax.xlane.f32.xlu0 %v803_v48 }
 0x387   :  { %v779_v49 = vpop.f32.mrb[16].mxu0 }
 0x388   :  { %v780_v50 = vadd.f32 %v779_v49, %v4204_v16  ;;  %v3540_v51 = vpop.f32.mrb[17].mxu0 }
 0x389   :  { %v782_v52 = vpop.f32.mrb[18].mxu0 }
 0x38a   :  { %v3541_v53 = vpop.f32.mrb[19].mxu0  ;;  %v806_v55 = vsel %vm416_vm2, %v780_v50, -inf }
 0x38b   :  { %807 = vmax.xlane.f32.xlu1 %v806_v55 }
 0x38d   :  { %v787_v56 = vpop.xlane.xlu0 %786 }
 0x38e   :  { %v809_v57 = vsub.f32 %v458_v60, %v787_v56 }
 0x390   :  { %v817_v59 = vmul.f32 1.442695, %v809_v57 }
 0x392   :  { %3881 = vpow2.f32 %v817_v59 }
 0x399   :  { %390 = vrot.lane.b32.xlu0 %v4163_v30, %s3974_s17 }
 0x39c   :  { %396 = vrot.lane.b32.xlu1 %v4163_v30, %s3975_s18  ;;  %v3882_v61 = vpop.eup %3881 }
 0x39d   :  { %v833_v62 = vsel %vm416_vm2, %v3882_v61, 0.0 }
 0x3b8   :  { %834 = vadd.xlane.f32.xlu0 %v833_v62 }
 0x400   :  { %v790_v63 = vpop.xlane.xlu1 %789  ;;  %v793_v0 = vpop.xlane.xlu0 %792 }
 0x401   :  { %v810_v1 = vsub.f32 %v504_v4, %v790_v63  ;;  %v811_v2 = vsub.f32 %v550_v5, %v793_v0  ;;  %v412_v63 = vpack.c.bf16 %v4126_v54, %v4126_v54 }
 0x403   :  { %v819_v3 = vmul.f32 1.442695, %v810_v1  ;;  %v821_v6 = vmul.f32 1.442695, %v811_v2 }
 0x405   :  { %3883 = vpow2.f32 %v819_v3  ;;  %v1070_v3 = vsel %vm884_vm3, %v412_v63, 0 }
 0x406   :  { %3885 = vpow2.f32 %v821_v6 }
 0x408   :  { %v796_v7 = vpop.xlane.xlu0 %795 }
 0x409   :  { %v812_v14 = vsub.f32 %v4207_v19, %v796_v7 }
 0x40b   :  { %v823_v20 = vmul.f32 1.442695, %v812_v14 }
 0x40c   :  { %v799_v8 = vpop.xlane.xlu0 %798 }
 0x40d   :  { %v813_v17 = vsub.f32 %v4210_v24, %v799_v8  ;;  %3887 = vpow2.f32 %v823_v20 }
 0x40f   :  { %v4230_v9 = vpop.eup %3883  ;;  %v825_v22 = vmul.f32 1.442695, %v813_v17 }
 0x410   :  { %v4232_v10 = vpop.eup %3885  ;;  %v805_v60 = vpop.xlane.xlu0 %804  ;;  %v836_v11 = vsel %vm416_vm2, %v4230_v9, 0.0 }
 0x411   :  { %837 = vadd.xlane.f32.xlu1 %v836_v11  ;;  %v839_v12 = vsel %vm416_vm2, %v4232_v10, 0.0  ;;  %v802_v18 = vpop.xlane.xlu1 %801  ;;  %v815_v25 = vsub.f32 %v4218_v36, %v805_v60  ;;  %3889 = vpow2.f32 %v825_v22 }
 0x412   :  { %840 = vadd.xlane.f32.xlu0 %v839_v12  ;;  %v814_v21 = vsub.f32 %v688_v35, %v802_v18 }
 0x413   :  { %v829_v29 = vmul.f32 1.442695, %v815_v25 }
 0x414   :  { %v391_v4 = vpop.permute.xlu0 %390  ;;  %v827_v23 = vmul.f32 1.442695, %v814_v21 }
 0x415   :  { %v409_v5 = vpack.c.bf16 %v391_v4, %v391_v4 }
 0x416   :  { %3891 = vpow2.f32 %v827_v23 }
 0x417   :  { %v932_v13 = vsel %vm884_vm3, %v409_v5, 0  ;;  %3893 = vpow2.f32 %v829_v29 }
 0x418   :  { %3549 = vmatpush3.bf16.msra.mxu0 %v932_v13  ;;  %v808_v28 = vpop.xlane.xlu1 %807 }
 0x419   :  { %3560 = vmatprep.subr.bf16.mxu0 %v3972_v15  ;;  %v816_v31 = vsub.f32 %v780_v50, %v808_v28 }
 0x41b   :  { %v831_v33 = vmul.f32 1.442695, %v816_v31 }
 0x41c   :  { %v397_v44 = vpop.permute.xlu1 %396 }
 0x41d   :  { %3895 = vpow2.f32 %v831_v33  ;;  %v410_v47 = vpack.c.bf16 %v397_v44, %v397_v44 }
 0x41f   :  { %v978_v51 = vsel %vm884_vm3, %v410_v47, 0 }
 0x422   :  { %392 = vrot.lane.b32.xlu1 %v4126_v54, %s3974_s17 }
 0x428   :  { %402 = vrot.lane.b32.xlu0 %v4163_v30, %s3976_s19  ;;  %v4247_v30 = vpop.eup %3887 }
 0x429   :  { %v4249_v19 = vpop.eup %3889  ;;  %v842_v34 = vsel %vm416_vm2, %v4247_v30, 0.0 }
 0x42a   :  { %v4253_v35 = vpop.eup %3891  ;;  %v845_v36 = vsel %vm416_vm2, %v4249_v19, 0.0 }
 0x42b   :  { %v848_v37 = vsel %vm416_vm2, %v4253_v35, 0.0  ;;  %v4259_v40 = vpop.eup %3893 }
 0x42c   :  { %v851_v41 = vsel %vm416_vm2, %v4259_v40, 0.0  ;;  %v4263_v42 = vpop.eup %3895 }
 0x42d   :  { %v854_v49 = vsel %vm416_vm2, %v4263_v42, 0.0 }
 0x445   :  { %v835_v24 = vpop.xlane.xlu0 %834 }
 0x446   :  { %3897 = vrcp.f32 %v835_v24  ;;  %843 = vadd.xlane.f32.xlu1 %v842_v34 }
 0x447   :  { %846 = vadd.xlane.f32.xlu0 %v845_v36 }
 0x44a   :  { %849 = vadd.xlane.f32.xlu1 %v848_v37 }
 0x44e   :  { %852 = vadd.xlane.f32.xlu1 %v851_v41 }
 0x450   :  { %v3898_v46 = vpop.eup %3897 }
 0x451   :  { %v865_v48 = vmul.f32 %v3898_v46, %v3882_v61 }
 0x452   :  { %855 = vadd.xlane.f32.xlu1 %v854_v49 }
 0x453   :  { %v873_v50 = vpack.c.bf16 %v865_v48, %v865_v48 }
 0x455   :  { %3545 = vmatmul.mubr.msk.bf16.vlgmr.msra.gmra.mrb[24].mxu1 %vm416_vm2, %v873_v50 }
 0x456   :  { %3555 = vmatpush3.bf16.msra.mxu1 %v978_v51  ;;  %3556 = vmatprep.mubr.msk.bf16.mxu1 %vm3973_vm1, %v3972_v15 }
 0x457   :  { %3566 = vmatprep.subr.bf16.mxu1 %v3972_v15 }
 0x45d   :  { %398 = vrot.lane.b32.xlu0 %v4126_v54, %s3975_s18 }
 0x463   :  { %404 = vrot.lane.b32.xlu1 %v4126_v54, %s3976_s19 }
 0x49e   :  { %v838_v52 = vpop.xlane.xlu1 %837 }
 0x49f   :  { %3899 = vrcp.f32 %v838_v52  ;;  %v841_v53 = vpop.xlane.xlu0 %840 }
 0x4a0   :  { %3901 = vrcp.f32 %v841_v53 }
 0x4a2   :  { %v393_v54 = vpop.permute.xlu1 %392 }
 0x4a3   :  { %v403_v55 = vpop.permute.xlu0 %402  ;;  %v413_v12 = vpack.c.bf16 %v393_v54, %v393_v54 }
 0x4a4   :  { %v411_v61 = vpack.c.bf16 %v403_v55, %v403_v55 }
 0x4a5   :  { %v1116_v21 = vsel %vm884_vm3, %v413_v12, 0 }
 0x4a6   :  { %v1024_v2 = vsel %vm884_vm3, %v411_v61, 0 }
 0x4a9   :  { %v3900_v56 = vpop.eup %3899 }
 0x4aa   :  { %v3902_v57 = vpop.eup %3901  ;;  %v866_v59 = vmul.f32 %v3900_v56, %v4230_v9  ;;  %v3843_v56 = vld [vmem:[%s4765_s3 + $0x30] sm:$0xff]  }
 0x4ab   :  { %v867_v62 = vmul.f32 %v3902_v57, %v4232_v10 }
 0x4ac   :  { %v874_v0 = vpack.c.bf16 %v866_v59, %v866_v59 }
 0x4ad   :  { %v875_v1 = vpack.c.bf16 %v867_v62, %v867_v62 }
 0x4ae   :  { %3551 = vmatmul.mubr.msk.bf16.vlgmr.msra.gmra.mrb[20].mxu0 %vm416_vm2, %v874_v0 }
 0x4af   :  { %3557 = vmatmul.mubr.msk.bf16.vlgmr.msra.gmra.mrb[28].mxu1 %vm416_vm2, %v875_v1  ;;  %3561 = vmatpush3.bf16.msra.mxu0 %v1024_v2  ;;  %v3844_v1 = vld [vmem:[%s4765_s3 + $0x38] sm:$0xff]  }
 0x4b0   :  { %3567 = vmatpush3.bf16.msra.mxu1 %v1070_v3  ;;  %3562 = vmatprep.mubr.msk.bf16.mxu0 %vm3973_vm1, %v3972_v15 }
 0x4b1   :  { %3568 = vmatprep.mubr.msk.bf16.mxu1 %vm3973_vm1, %v3972_v15  ;;  %3572 = vmatprep.subr.bf16.mxu0 %v3972_v15 }
 0x4b2   :  { %3578 = vmatprep.subr.bf16.mxu1 %v3972_v15 }
 0x4d3   :  { %v844_v6 = vpop.xlane.xlu1 %843 }
 0x4d4   :  { %3903 = vrcp.f32 %v844_v6  ;;  %v847_v7 = vpop.xlane.xlu0 %846 }
 0x4d5   :  { %3905 = vrcp.f32 %v847_v7 }
 0x4d7   :  { %v850_v8 = vpop.xlane.xlu1 %849 }
 0x4d8   :  { %3907 = vrcp.f32 %v850_v8  ;;  %v399_v10 = vpop.permute.xlu0 %398 }
 0x4d9   :  { %v414_v14 = vpack.c.bf16 %v399_v10, %v399_v10 }
 0x4db   :  { %v853_v9 = vpop.xlane.xlu1 %852  ;;  %v1162_v22 = vsel %vm884_vm3, %v414_v14, 0 }
 0x4dc   :  { %3909 = vrcp.f32 %v853_v9 }
 0x4de   :  { %v3904_v60 = vpop.eup %3903 }
 0x4df   :  { %v3906_v11 = vpop.eup %3905  ;;  %v868_v4 = vmul.f32 %v3904_v60, %v4247_v30  ;;  %v856_v5 = vpop.xlane.xlu1 %855 }
 0x4e0   :  { %v869_v13 = vmul.f32 %v3906_v11, %v4249_v19  ;;  %3911 = vrcp.f32 %v856_v5 }
 0x4e1   :  { %v876_v17 = vpack.c.bf16 %v868_v4, %v868_v4 }
 0x4e2   :  { %v3908_v18 = vpop.eup %3907  ;;  %v877_v20 = vpack.c.bf16 %v869_v13, %v869_v13 }
 0x4e3   :  { %3563 = vmatmul.mubr.msk.bf16.vlgmr.msra.gmra.mrb[24].mxu0 %vm416_vm2, %v876_v17  ;;  %v405_v23 = vpop.permute.xlu1 %404  ;;  %v870_v25 = vmul.f32 %v3908_v18, %v4253_v35 }
 0x4e4   :  { %3569 = vmatmul.mubr.msk.bf16.vlgmr.msra.gmra.mrb[32].mxu1 %vm416_vm2, %v877_v20  ;;  %3573 = vmatpush3.bf16.msra.mxu0 %v1116_v21  ;;  %v415_v31 = vpack.c.bf16 %v405_v23, %v405_v23 }
 0x4e5   :  { %3579 = vmatpush3.bf16.msra.mxu1 %v1162_v22  ;;  %3574 = vmatprep.mubr.msk.bf16.mxu0 %vm3973_vm1, %v3972_v15  ;;  %v878_v33 = vpack.c.bf16 %v870_v25, %v870_v25 }
 0x4e6   :  { %v3910_v28 = vpop.eup %3909  ;;  %3580 = vmatprep.mubr.msk.bf16.mxu1 %vm3973_vm1, %v3972_v15  ;;  %3584 = vmatprep.subr.bf16.mxu0 %v3972_v15  ;;  %v1208_v24 = vsel %vm884_vm3, %v415_v31, 0 }
 0x4e7   :  { %v871_v29 = vmul.f32 %v3910_v28, %v4259_v40  ;;  %3590 = vmatprep.subr.bf16.mxu1 %v3972_v15 }
 0x4e9   :  { %v879_v30 = vpack.c.bf16 %v871_v29, %v871_v29 }
 0x4ea   :  { %v3912_v19 = vpop.eup %3911 }
 0x4eb   :  { %3575 = vmatmul.mubr.msk.bf16.vlgmr.msra.gmra.mrb[28].mxu0 %vm416_vm2, %v878_v33  ;;  %v872_v34 = vmul.f32 %v3912_v19, %v4263_v42 }
 0x4ec   :  { %3581 = vmatmul.mubr.msk.bf16.vlgmr.msra.gmra.mrb[36].mxu1 %vm416_vm2, %v879_v30  ;;  %3585 = vmatpush3.bf16.msra.mxu0 %v1208_v24 }
 0x4ed   :  { %3586 = vmatprep.mubr.msk.bf16.mxu0 %vm3973_vm1, %v3972_v15  ;;  %3594 = vmatprep.mubr.msk.bf16.mxu1 %vm3973_vm1, %v3972_v15  ;;  %v880_v35 = vpack.c.bf16 %v872_v34, %v872_v34 }
 0x4ee   :  { %3598 = vmatprep.subr.bf16.mxu0 %v3972_v15  ;;  %3591 = vmatpush3.bf16.msra.mxu1 %v3843_v56 }
 0x4ef   :  { %3592 = vmatprep.subr.bf16.mxu1 %v3972_v15 }
 0x4f2   :  { %3593 = vmatpush3.bf16.msra.mxu1 %v3844_v1 }
 0x4f3   :  { %3587 = vmatmul.mubr.msk.bf16.vlgmr.msra.gmra.mrb[32].mxu0 %vm416_vm2, %v880_v35  ;;  %3606 = vmatprep.subr.bf16.mxu1 %v3972_v15  ;;  %v1285_v35 = vsub.s32 3, %v4073_v26 }
 0x4f4   :  { %3602 = vmatprep.mubr.msk.bf16.mxu0 %vm3973_vm1, %v3972_v15 }
 0x528   :  { %v922_v36 = vpop.f32.mrb[24].mxu1 }
 0x529   :  { %v3546_v37 = vpop.f32.mrb[25].mxu1 }
 0x52a   :  { %v925_v40 = vpop.f32.mrb[26].mxu1 }
 0x52b   :  { %v3547_v41 = vpop.f32.mrb[27].mxu1 }
 0x581   :  { %v968_v44 = vpop.f32.mrb[20].mxu0 }
 0x582   :  { %v1014_v42 = vpop.f32.mrb[28].mxu1  ;;  %v3552_v46 = vpop.f32.mrb[21].mxu0 }
 0x583   :  { %v3558_v47 = vpop.f32.mrb[29].mxu1  ;;  %v971_v48 = vpop.f32.mrb[22].mxu0 }
 0x584   :  { %v1017_v49 = vpop.f32.mrb[30].mxu1  ;;  %v3553_v50 = vpop.f32.mrb[23].mxu0 }
 0x585   :  { %v3559_v51 = vpop.f32.mrb[31].mxu1 }
 0x5b6   :  { %v1060_v52 = vpop.f32.mrb[24].mxu0 }
 0x5b7   :  { %v1106_v53 = vpop.f32.mrb[32].mxu1  ;;  %v3564_v55 = vpop.f32.mrb[25].mxu0 }
 0x5b8   :  { %v3570_v57 = vpop.f32.mrb[33].mxu1  ;;  %v1063_v59 = vpop.f32.mrb[26].mxu0 }
 0x5b9   :  { %v1109_v61 = vpop.f32.mrb[34].mxu1  ;;  %v3565_v62 = vpop.f32.mrb[27].mxu0 }
 0x5ba   :  { %v3571_v63 = vpop.f32.mrb[35].mxu1 }
 0x5bb   :  { %v3846_v63 = vld [vmem:[%s4769_s4 + $0x8] sm:$0xff]  }
 0x5be   :  { %v1152_v0 = vpop.f32.mrb[28].mxu0 }
 0x5bf   :  { %v3807_v2 = vpack.i.bf16 %v1152_v0, %v968_v44  ;;  %v1198_v3 = vpop.f32.mrb[36].mxu1  ;;  %v3576_v54 = vpop.f32.mrb[29].mxu0 }
 0x5c0   :  { %v3812_v6 = vpack.i.bf16 %v1198_v3, %v1014_v42  ;;  %v3582_v7 = vpop.f32.mrb[37].mxu1  ;;  %v1155_v8 = vpop.f32.mrb[30].mxu0 }
 0x5c1   :  { %v1201_v9 = vpop.f32.mrb[38].mxu1  ;;  %3808 = vrot.lane.b32.xlu0 %v3807_v2, %s3978_s24  ;;  %v3577_v10 = vpop.f32.mrb[31].mxu0  ;;  %v1373_v7 = vsub.s32 4, %v4073_v26 }
 0x5c2   :  { %3813 = vrot.lane.b32.xlu1 %v3812_v6, %s3979_s25  ;;  %v3583_v60 = vpop.f32.mrb[39].mxu1 }
 0x5c3   :  { %v1374_v9 = vrot.slane %v4112_v43, %v1373_v7  ;;  %v1379_v60 = vsub.s32 5, %v4073_v26 }
 0x5c6   :  { %v1244_v11 = vpop.f32.mrb[32].mxu0 }
 0x5c7   :  { %v3817_v12 = vpack.i.bf16 %v1244_v11, %v1060_v52  ;;  %v3588_v4 = vpop.f32.mrb[33].mxu0 }
 0x5c8   :  { %v1247_v5 = vpop.f32.mrb[34].mxu0 }
 0x5c9   :  { %3818 = vrot.lane.b32.xlu0 %v3817_v12, %s3980_s26  ;;  %v3589_v13 = vpop.f32.mrb[35].mxu0  ;;  %v1380_v5 = vrot.slane %v4112_v43, %v1379_v60 }
 0x633   :  { %v3809_v14 = vpop.permute.xlu0 %3808 }
 0x634   :  { %v3811_v17 = vunpack.i.h.bf16 %v3809_v14  ;;  %v3810_v18 = vunpack.i.l.bf16 %v3809_v14  ;;  %v3814_v20 = vpop.permute.xlu1 %3813 }
 0x635   :  { %v3816_v21 = vunpack.i.h.bf16 %v3814_v20  ;;  %v3815_v22 = vunpack.i.l.bf16 %v3814_v20  ;;  %v3847_v20 = vld [vmem:[%s4770_s5] sm:$0xff]  }
 0x636   :  { %v1274_v23 = vsel %vm416_vm2, %v922_v36, %v3810_v18  ;;  %v1275_v25 = vsel %vm416_vm2, %v1106_v53, %v3811_v17  ;;  %v1286_v36 = vrot.slane %v4112_v43, %v1285_v35  ;;  %v3848_v43 = vld [vmem:[%s4770_s5 + $0x8] sm:$0xff]  }
 0x637   :  { %v1278_v33 = vsel %vm1276_vm4, %v1275_v25, %v3816_v21  ;;  %v1277_v30 = vsel %vm1276_vm4, %v1274_v23, %v3815_v22  ;;  %v3849_v21 = vld [vmem:[%s4770_s5 + $0x10] sm:$0xff]   ;;  %v3850_v22 = vld [vmem:[%s4770_s5 + $0x18] sm:$0xff]   ;;  %v3851_v23 = vld [vmem:[%s4770_s5 + $0x20] sm:$0xff]  }
 0x638   :  { %v3852_v25 = vld [vmem:[%s4770_s5 + $0x28] sm:$0xff]  }
 0x63b   :  { %v3819_v28 = vpop.permute.xlu0 %3818 }
 0x63c   :  { %v3821_v29 = vunpack.i.h.bf16 %v3819_v28  ;;  %v3820_v31 = vunpack.i.l.bf16 %v3819_v28  ;;  %v3853_v28 = vld [vmem:[%s4770_s5 + $0x30] sm:$0xff]  }
 0x63e   :  { %v1280_v19 = vsel %vm1279_vm5, %v1277_v30, %v3820_v31  ;;  %v1281_v24 = vsel %vm1279_vm5, %v1278_v33, %v3821_v29  ;;  %v3854_v29 = vld [vmem:[%s4770_s5 + $0x38] sm:$0xff]   ;;  %v3252_v31 = vld [vmem:[%s4771_s7] ss:$0 sm:$0xff] }
 0x63f   :  { %v1282_v34 = vpack.c.bf16 %v1281_v24, %v1280_v19 }
 0x641   :  { %3595 = vmatmul.mubr.msk.bf16.vlgmr.msra.gmra.mrb[40].mxu1 %vm78_vm0, %v1282_v34 }
 0x642   :  { %3622 = vmatprep.mubr.msk.bf16.mxu1 %vm3973_vm1, %v3972_v15  ;;  %3607 = vmatpush3.bf16.msra.mxu1 %v3847_v20 }
 0x643   :  { %3608 = vmatprep.subr.bf16.mxu1 %v3972_v15 }
 0x646   :  { %3609 = vmatpush3.bf16.msra.mxu1 %v3848_v43 }
 0x647   :  { %3610 = vmatprep.subr.bf16.mxu1 %v3972_v15 }
 0x64a   :  { %3611 = vmatpush3.bf16.msra.mxu1 %v3849_v21 }
 0x64b   :  { %3612 = vmatprep.subr.bf16.mxu1 %v3972_v15 }
 0x64e   :  { %3613 = vmatpush3.bf16.msra.mxu1 %v3850_v22 }
 0x64f   :  { %3614 = vmatprep.subr.bf16.mxu1 %v3972_v15 }
 0x652   :  { %3615 = vmatpush3.bf16.msra.mxu1 %v3851_v23  ;;  %v3856_v23 = vld [vmem:[%s4765_s3 + $0x48] sm:$0xff]  }
 0x653   :  { %3616 = vmatprep.subr.bf16.mxu1 %v3972_v15 }
 0x656   :  { %3617 = vmatpush3.bf16.msra.mxu1 %v3852_v25 }
 0x657   :  { %3618 = vmatprep.subr.bf16.mxu1 %v3972_v15 }
 0x65a   :  { %3619 = vmatpush3.bf16.msra.mxu1 %v3853_v28 }
 0x65b   :  { %3620 = vmatprep.subr.bf16.mxu1 %v3972_v15 }
 0x65e   :  { %3621 = vmatpush3.bf16.msra.mxu1 %v3854_v29 }
 0x65f   :  { %3656 = vmatprep.subr.bf16.mxu1 %v3972_v15 }
 0x714   :  { %v1336_v37 = vpop.f32.mrb[40].mxu1 }
 0x715   :  { %v1337_v40 = vadd.f32 %v1336_v37, %v1286_v36  ;;  %v3596_v41 = vpop.f32.mrb[41].mxu1 }
 0x716   :  { %v1339_v44 = vpop.f32.mrb[42].mxu1 }
 0x717   :  { %v1340_v42 = vadd.f32 %v1339_v44, %v1286_v36  ;;  %v3597_v46 = vpop.f32.mrb[43].mxu1  ;;  %v1343_v47 = vadd.f32 %v1337_v40, %v4086_v38 }
 0x719   :  { %v1345_v48 = vsel %vm78_vm0, %v1343_v47, 0.0  ;;  %v1344_v49 = vadd.f32 %v1340_v42, %v4088_v39  ;;  %v3845_v39 = vld [vmem:[%s4769_s4] sm:$0xff]  }
 0x71a   :  { %1346 = vadd.xlane.f32.xlu1 %v1345_v48  ;;  %3599 = vmatpush3.bf16.msra.mxu0 %v3845_v39  ;;  %v3969_v39 = vld [vmem:[%s4767_s6] sm:$0xff] }
 0x71b   :  { %v1348_v50 = vsel %vm78_vm0, %v1344_v49, 0.0  ;;  %3600 = vmatprep.subr.bf16.mxu0 %v3972_v15 }
 0x71c   :  { %1349 = vadd.xlane.f32.xlu0 %v1348_v50 }
 0x71e   :  { %3601 = vmatpush3.bf16.msra.mxu0 %v3846_v63 }
 0x71f   :  { %3626 = vmatprep.subr.bf16.mxu0 %v3972_v15 }
 0x7a7   :  { %v1347_v51 = vpop.xlane.xlu1 %1346 }
 0x7a8   :  { %v1351_v52 = vmul.f32 0.03125, %v1347_v51 }
 0x7a9   :  { %v1350_v53 = vpop.xlane.xlu0 %1349 }
 0x7aa   :  { %v1353_v55 = vsub.f32 %v1343_v47, %v1351_v52  ;;  %v1352_v56 = vmul.f32 0.03125, %v1350_v53 }
 0x7ac   :  { %v1354_v57 = vsub.f32 %v1344_v49, %v1352_v56  ;;  %v1355_v59 = vmul.f32 %v1353_v55, %v1353_v55 }
 0x7ae   :  { %v1357_v61 = vsel %vm78_vm0, %v1355_v59, 0.0  ;;  %v1356_v62 = vmul.f32 %v1354_v57, %v1354_v57 }
 0x7af   :  { %1358 = vadd.xlane.f32.xlu0 %v1357_v61 }
 0x7b0   :  { %v1360_v38 = vsel %vm78_vm0, %v1356_v62, 0.0 }
 0x7b3   :  { %1361 = vadd.xlane.f32.xlu0 %v1360_v38  ;;  %v1467_v38 = vsub.s32 6, %v4073_v26 }
 0x7b5   :  { %v1468_v63 = vrot.slane %v3969_v39, %v1467_v38 }
 0x83c   :  { %v1359_v0 = vpop.xlane.xlu0 %1358 }
 0x83d   :  { %v1363_v1 = vmul.f32 0.03125, %v1359_v0 }
 0x83f   :  { %v1365_v2 = vadd.f32 1e-12, %v1363_v1 }
 0x840   :  { %v1362_v3 = vpop.xlane.xlu0 %1361 }
 0x841   :  { %3913 = vrsqrt.f32 %v1365_v2  ;;  %v1364_v54 = vmul.f32 0.03125, %v1362_v3 }
 0x843   :  { %v1366_v6 = vadd.f32 1e-12, %v1364_v54 }
 0x845   :  { %3915 = vrsqrt.f32 %v1366_v6 }
 0x84b   :  { %v3914_v8 = vpop.eup %3913 }
 0x84c   :  { %v1369_v10 = vmul.f32 %v3914_v8, %v1353_v55 }
 0x84e   :  { %v1375_v12 = vmul.f32 %v1374_v9, %v1369_v10 }
 0x84f   :  { %v3916_v11 = vpop.eup %3915 }
 0x850   :  { %v1370_v4 = vmul.f32 %v3916_v11, %v1354_v57  ;;  %v4362_v14 = vadd.f32 %v1380_v5, %v1375_v12 }
 0x852   :  { %v1376_v13 = vmul.f32 %v1374_v9, %v1370_v4 }
 0x854   :  { %v4364_v17 = vadd.f32 %v1380_v5, %v1376_v13 }
 0x856   :  { %v1383_v18 = vpack.c.bf16 %v4364_v17, %v4362_v14 }
 0x858   :  { %3603 = vmatmul.mubr.msk.bf16.vlgmr.msra.gmra.mrb[36].mxu0 %vm78_vm0, %v1383_v18 }
 0x859   :  { %3630 = vmatprep.mubr.msk.bf16.mxu0 %vm3973_vm1, %v3972_v15 }
 0x92b   :  { %v1439_v33 = vpop.f32.mrb[36].mxu0 }
 0x92c   :  { %v1440_v30 = vadd.f32 %v3252_v31, %v1439_v33  ;;  %v3604_v19 = vpop.f32.mrb[37].mxu0 }
 0x92d   :  { %v1442_v24 = vpop.f32.mrb[38].mxu0  ;;  %v1588_v19 = vsub.s32 7, %v4073_v26  ;;  %v3875_v26 = vld [vmem:[%s4773_s9] sm:$0xff]  }
 0x92e   :  { %v1448_v34 = vmul.f32 0.044715, %v1440_v30  ;;  %v1443_v36 = vadd.f32 %v3252_v31, %v1442_v24  ;;  %v3605_v37 = vpop.f32.mrb[39].mxu0  ;;  %v1446_v55 = vmul.f32 0.5, %v1440_v30 }
 0x92f   :  { %v1589_v24 = vrot.slane %v3969_v39, %v1588_v19 }
 0x930   :  { %v1450_v40 = vmul.f32 %v1448_v34, %v1440_v30  ;;  %v1449_v41 = vmul.f32 0.044715, %v1443_v36  ;;  %v1447_v56 = vmul.f32 0.5, %v1443_v36 }
 0x932   :  { %v1452_v44 = vmul.f32 %v1450_v40, %v1440_v30  ;;  %v1451_v42 = vmul.f32 %v1449_v41, %v1443_v36 }
 0x934   :  { %v1454_v46 = vadd.f32 %v1452_v44, %v1440_v30  ;;  %v1453_v47 = vmul.f32 %v1451_v42, %v1443_v36  ;;  %v3264_v44 = vld [vmem:[%s4767_s6 + $0x8] ss:$0 sm:$0xff] }
 0x936   :  { %v1456_v48 = vmul.f32 0.7978846, %v1454_v46  ;;  %v1455_v49 = vadd.f32 %v1453_v47, %v1443_v36 }
 0x938   :  { %3917 = vtanh.f32 %v1456_v48  ;;  %v1457_v50 = vmul.f32 0.7978846, %v1455_v49  ;;  %v3857_v48 = vld [vmem:[%s4765_s3 + $0x50] sm:$0xff]  }
 0x93a   :  { %3919 = vtanh.f32 %v1457_v50  ;;  %v3858_v50 = vld [vmem:[%s4765_s3 + $0x58] sm:$0xff]  }
 0x942   :  { %v3918_v51 = vpop.eup %3917 }
 0x943   :  { %v1460_v52 = vadd.f32 1.0, %v3918_v51  ;;  %v3859_v51 = vld [vmem:[%s4765_s3 + $0x60] sm:$0xff]  }
 0x944   :  { %v3920_v53 = vpop.eup %3919 }
 0x945   :  { %v1461_v57 = vadd.f32 1.0, %v3920_v53  ;;  %v1462_v59 = vmul.f32 %v1460_v52, %v1446_v55  ;;  %v3860_v52 = vld [vmem:[%s4765_s3 + $0x68] sm:$0xff]  }
 0x947   :  { %v1463_v61 = vmul.f32 %v1461_v57, %v1447_v56 }
 0x949   :  { %v1464_v62 = vpack.c.bf16 %v1463_v61, %v1462_v59  ;;  %v4468_v59 = vld [vmem:[%s4767_s6 + $0x10] sm:$0xff] }
 0x94a   :  { %v1706_v61 = vrot.slane %v4468_v59, %v4083_v32  ;;  %v1646_v39 = vrot.slane %v4468_v59, %v4076_v27 }
 0x94b   :  { %3623 = vmatmul.mubr.bf16.vlgmr.msra.gmra.mrb[44].mxu1 %v1464_v62 }
 0x94c   :  { %3658 = vmatprep.mubr.msk.bf16.mxu1 %vm3973_vm1, %v3972_v15 }
 0xa1e   :  { %v1551_v0 = vpop.f32.mrb[44].mxu1 }
 0xa1f   :  { %v1552_v1 = vadd.f32 %v1551_v0, %v1468_v63  ;;  %v3624_v2 = vpop.f32.mrb[45].mxu1 }
 0xa20   :  { %v1554_v3 = vpop.f32.mrb[46].mxu1 }
 0xa21   :  { %v1555_v54 = vadd.f32 %v1554_v3, %v1468_v63  ;;  %v3625_v6 = vpop.f32.mrb[47].mxu1  ;;  %v1558_v8 = vadd.f32 %v1552_v1, %v4362_v14 }
 0xa23   :  { %v1560_v9 = vsel %vm78_vm0, %v1558_v8, 0.0  ;;  %v1559_v10 = vadd.f32 %v1555_v54, %v4364_v17  ;;  %v3855_v17 = vld [vmem:[%s4765_s3 + $0x40] sm:$0xff]  }
 0xa24   :  { %1561 = vadd.xlane.f32.xlu1 %v1560_v9  ;;  %3627 = vmatpush3.bf16.msra.mxu0 %v3855_v17 }
 0xa25   :  { %v1563_v11 = vsel %vm78_vm0, %v1559_v10, 0.0  ;;  %3628 = vmatprep.subr.bf16.mxu0 %v3972_v15 }
 0xa26   :  { %1564 = vadd.xlane.f32.xlu0 %v1563_v11 }
 0xa28   :  { %3629 = vmatpush3.bf16.msra.mxu0 %v3856_v23 }
 0xa29   :  { %3634 = vmatprep.subr.bf16.mxu0 %v3972_v15 }
 0xab1   :  { %v1562_v12 = vpop.xlane.xlu1 %1561 }
 0xab2   :  { %v1566_v4 = vmul.f32 0.03125, %v1562_v12 }
 0xab3   :  { %v1565_v5 = vpop.xlane.xlu0 %1564 }
 0xab4   :  { %v1568_v13 = vsub.f32 %v1558_v8, %v1566_v4  ;;  %v1567_v18 = vmul.f32 0.03125, %v1565_v5  ;;  %v1763_v8 = vrot.slane %v4468_v59, %v4117_v45 }
 0xab6   :  { %v1569_v20 = vsub.f32 %v1559_v10, %v1567_v18  ;;  %v1570_v43 = vmul.f32 %v1568_v13, %v1568_v13 }
 0xab8   :  { %v1572_v21 = vsel %vm78_vm0, %v1570_v43, 0.0  ;;  %v1571_v22 = vmul.f32 %v1569_v20, %v1569_v20 }
 0xab9   :  { %1573 = vadd.xlane.f32.xlu1 %v1572_v21 }
 0xaba   :  { %v1575_v14 = vsel %vm78_vm0, %v1571_v22, 0.0 }
 0xabb   :  { %1576 = vadd.xlane.f32.xlu0 %v1575_v14 }
 0xb46   :  { %v1574_v25 = vpop.xlane.xlu1 %1573 }
 0xb47   :  { %v1578_v28 = vmul.f32 0.03125, %v1574_v25 }
 0xb48   :  { %v1577_v29 = vpop.xlane.xlu0 %1576 }
 0xb49   :  { %v1580_v31 = vadd.f32 1e-12, %v1578_v28  ;;  %v1579_v33 = vmul.f32 0.03125, %v1577_v29 }
 0xb4b   :  { %3921 = vrsqrt.f32 %v1580_v31  ;;  %v1581_v30 = vadd.f32 1e-12, %v1579_v33 }
 0xb4d   :  { %3923 = vrsqrt.f32 %v1581_v30 }
 0xb55   :  { %v3922_v34 = vpop.eup %3921 }
 0xb56   :  { %v1584_v36 = vmul.f32 %v3922_v34, %v1568_v13 }
 0xb57   :  { %v3924_v37 = vpop.eup %3923 }
 0xb58   :  { %v1590_v40 = vmul.f32 %v1589_v24, %v1584_v36  ;;  %v1585_v41 = vmul.f32 %v3924_v37, %v1569_v20 }
 0xb5a   :  { %v1591_v42 = vmul.f32 %v1589_v24, %v1585_v41  ;;  %v4434_v46 = vadd.f32 %v3264_v44, %v1590_v40 }
 0xb5c   :  { %v4436_v47 = vadd.f32 %v3264_v44, %v1591_v42 }
 0xb5e   :  { %v1642_v49 = vpack.c.bf16 %v4436_v47, %v4434_v46 }
 0xb60   :  { %3631 = vmatmul.mubr.msk.bf16.vlgmr.msra.gmra.mrb[40].mxu0 %vm78_vm0, %v1642_v49 }
 0xb61   :  { %3635 = vmatpush3.bf16.msra.mxu0 %v3857_v48  ;;  %3638 = vmatprep.mubr.msk.bf16.mxu0 %vm3973_vm1, %v3972_v15 }
 0xb62   :  { %3636 = vmatprep.subr.bf16.mxu0 %v3972_v15 }
 0xb65   :  { %3637 = vmatpush3.bf16.msra.mxu0 %v3858_v50 }
 0xb66   :  { %3642 = vmatprep.subr.bf16.mxu0 %v3972_v15 }
 0xb68   :  { %3639 = vmatmul.mubr.msk.bf16.vlgmr.msra.gmra.mrb[44].mxu0 %vm78_vm0, %v1642_v49 }
 0xb69   :  { %3643 = vmatpush3.bf16.msra.mxu0 %v3859_v51  ;;  %3646 = vmatprep.mubr.msk.bf16.mxu0 %vm3973_vm1, %v3972_v15 }
 0xb6a   :  { %3644 = vmatprep.subr.bf16.mxu0 %v3972_v15 }
 0xb6d   :  { %3645 = vmatpush3.bf16.msra.mxu0 %v3860_v52 }
 0xb6e   :  { %3650 = vmatprep.subr.bf16.mxu0 %v3972_v15 }
 0xb70   :  { %3647 = vmatmul.mubr.msk.bf16.vlgmr.msra.gmra.mrb[48].mxu0 %vm78_vm0, %v1642_v49 }
 0xb71   :  { %3652 = vmatprep.mubr.msk.bf16.mxu0 %vm3973_vm1, %v3972_v15 }
 0xc33   :  { %v1696_v53 = vpop.f32.mrb[40].mxu0 }
 0xc34   :  { %v3632_v55 = vpop.f32.mrb[41].mxu0  ;;  %v1697_v54 = vadd.f32 %v1696_v53, %v1646_v39 }
 0xc35   :  { %v1699_v56 = vpop.f32.mrb[42].mxu0 }
 0xc36   :  { %v3633_v57 = vpop.f32.mrb[43].mxu0  ;;  %v1837_v11 = vpack.c.bf16 %v1697_v54, %v1697_v54  ;;  %v1700_v5 = vadd.f32 %v1699_v56, %v1646_v39 }
 0xc38   :  { %v1841_v49 = vpack.c.bf16 %v1700_v5, %v1700_v5 }
 0xc3b   :  { %v1753_v62 = vpop.f32.mrb[44].mxu0 }
 0xc3c   :  { %v1754_v63 = vadd.f32 %v1753_v62, %v1706_v61  ;;  %v3640_v0 = vpop.f32.mrb[45].mxu0 }
 0xc3d   :  { %v1756_v1 = vpop.f32.mrb[46].mxu0 }
 0xc3e   :  { %1853 = vrot.lane.b32.xlu0 %v1754_v63, %s3975_s18  ;;  %1847 = vrot.lane.b32.xlu1 %v1754_v63, %s3974_s17  ;;  %v3641_v2 = vpop.f32.mrb[47].mxu0  ;;  %v1865_v3 = vpack.c.bf16 %v1754_v63, %v1754_v63  ;;  %v1757_v27 = vadd.f32 %v1756_v1, %v1706_v61 }
 0xc40   :  { %v1905_v6 = vsel %vm416_vm2, %v1865_v3, 0  ;;  %v1869_v31 = vpack.c.bf16 %v1757_v27, %v1757_v27 }
 0xc41   :  { %3651 = vmatpush3.bf16.xpose.msra.mxu0 %v1905_v6 }
 0xc42   :  { %1831 = vrot.lane.b32.xlu0 %v1697_v54, %s3976_s19  ;;  %1819 = vrot.lane.b32.xlu1 %v1697_v54, %s3974_s17  ;;  %v2089_v34 = vsel %vm416_vm2, %v1869_v31, 0 }
 0xc43   :  { %v1810_v32 = vpop.f32.mrb[48].mxu0  ;;  %3662 = vmatprep.subr.bf16.mxu0 %v3972_v15 }
 0xc44   :  { %v3648_v9 = vpop.f32.mrb[49].mxu0  ;;  %v4514_v50 = vadd.f32 %v1810_v32, %v1763_v8 }
 0xc45   :  { %v1813_v10 = vpop.f32.mrb[50].mxu0 }
 0xc46   :  { %v4482_v12 = vadd.f32 %v1813_v10, %v1763_v8  ;;  %1859 = vrot.lane.b32.xlu1 %v1754_v63, %s3976_s19  ;;  %1855 = vrot.lane.b32.xlu0 %v1757_v27, %s3975_s18  ;;  %v3649_v4 = vpop.f32.mrb[51].mxu0  ;;  %v1893_v57 = vpack.c.bf16 %v4514_v50, %v4514_v50 }
 0xc48   :  { %3653 = vmatmul.mubr.msk.bf16.vlgmr.msra.gmra.mrb[52].mxu0 %vm416_vm2, %v1837_v11  ;;  %v2369_v39 = vsel %vm884_vm3, %v1893_v57, 0 }
 0xc49   :  { %3664 = vmatprep.mubr.msk.bf16.mxu0 %vm3973_vm1, %v3972_v15 }
 0xc4a   :  { %1825 = vrot.lane.b32.xlu1 %v1697_v54, %s3975_s18  ;;  %1861 = vrot.lane.b32.xlu0 %v1757_v27, %s3976_s19 }
 0xc4e   :  { %1833 = vrot.lane.b32.xlu0 %v1700_v5, %s3976_s19  ;;  %1849 = vrot.lane.b32.xlu1 %v1757_v27, %s3974_s17 }
 0xc52   :  { %1821 = vrot.lane.b32.xlu1 %v1700_v5, %s3974_s17 }
 0xc56   :  { %1827 = vrot.lane.b32.xlu1 %v1700_v5, %s3975_s18 }
 0xcb0   :  { %v1854_v13 = vpop.permute.xlu0 %1853  ;;  %v1848_v18 = vpop.permute.xlu1 %1847 }
 0xcb1   :  { %v1867_v20 = vpack.c.bf16 %v1854_v13, %v1854_v13  ;;  %v1866_v43 = vpack.c.bf16 %v1848_v18, %v1848_v18 }
 0xcb3   :  { %v1997_v21 = vsel %vm416_vm2, %v1867_v20, 0  ;;  %v1951_v22 = vsel %vm416_vm2, %v1866_v43, 0 }
 0xcb4   :  { %3657 = vmatpush3.bf16.xpose.msra.mxu1 %v1951_v22  ;;  %v1820_v14 = vpop.permute.xlu1 %1819  ;;  %3663 = vmatpush3.bf16.xpose.msra.mxu0 %v1997_v21  ;;  %v1832_v17 = vpop.permute.xlu0 %1831 }
 0xcb5   :  { %3668 = vmatprep.subr.bf16.mxu1 %v3972_v15  ;;  %3674 = vmatprep.subr.bf16.mxu0 %v3972_v15  ;;  %v1838_v25 = vpack.c.bf16 %v1820_v14, %v1820_v14  ;;  %v1840_v37 = vpack.c.bf16 %v1832_v17, %v1832_v17 }
 0xcb8   :  { %v1860_v23 = vpop.permute.xlu1 %1859  ;;  %v1856_v24 = vpop.permute.xlu0 %1855 }
 0xcb9   :  { %v1868_v28 = vpack.c.bf16 %v1860_v23, %v1860_v23  ;;  %v1871_v41 = vpack.c.bf16 %v1856_v24, %v1856_v24 }
 0xcbb   :  { %v2043_v29 = vsel %vm416_vm2, %v1868_v28, 0  ;;  %3659 = vmatmul.mubr.msk.bf16.vlgmr.msra.gmra.mrb[48].mxu1 %vm416_vm2, %v1838_v25  ;;  %v2181_v51 = vsel %vm416_vm2, %v1871_v41, 0 }
 0xcbc   :  { %3669 = vmatpush3.bf16.xpose.msra.mxu1 %v2043_v29  ;;  %v1826_v33 = vpop.permute.xlu1 %1825  ;;  %3670 = vmatprep.mubr.msk.bf16.mxu1 %vm3973_vm1, %v3972_v15  ;;  %v1862_v42 = vpop.permute.xlu0 %1861 }
 0xcbd   :  { %v1839_v30 = vpack.c.bf16 %v1826_v33, %v1826_v33  ;;  %3680 = vmatprep.subr.bf16.mxu1 %v3972_v15  ;;  %v1872_v52 = vpack.c.bf16 %v1862_v42, %v1862_v42 }
 0xcbf   :  { %3665 = vmatmul.mubr.msk.bf16.vlgmr.msra.gmra.mrb[56].mxu0 %vm416_vm2, %v1839_v30  ;;  %v2227_v56 = vsel %vm416_vm2, %v1872_v52, 0 }
 0xcc0   :  { %3675 = vmatpush3.bf16.xpose.msra.mxu0 %v2089_v34  ;;  %v1850_v36 = vpop.permute.xlu1 %1849  ;;  %3676 = vmatprep.mubr.msk.bf16.mxu0 %vm3973_vm1, %v3972_v15  ;;  %v1834_v62 = vpop.permute.xlu0 %1833 }
 0xcc1   :  { %v1870_v40 = vpack.c.bf16 %v1850_v36, %v1850_v36  ;;  %3686 = vmatprep.subr.bf16.mxu0 %v3972_v15  ;;  %v1844_v63 = vpack.c.bf16 %v1834_v62, %v1834_v62 }
 0xcc3   :  { %v2135_v44 = vsel %vm416_vm2, %v1870_v40, 0  ;;  %3671 = vmatmul.mubr.msk.bf16.vlgmr.msra.gmra.mrb[52].mxu1 %vm416_vm2, %v1840_v37 }
 0xcc4   :  { %3681 = vmatpush3.bf16.xpose.msra.mxu1 %v2135_v44  ;;  %v1822_v48 = vpop.permute.xlu1 %1821  ;;  %3682 = vmatprep.mubr.msk.bf16.mxu1 %vm3973_vm1, %v3972_v15 }
 0xcc5   :  { %3692 = vmatprep.subr.bf16.mxu1 %v3972_v15  ;;  %v1842_v53 = vpack.c.bf16 %v1822_v48, %v1822_v48 }
 0xcc7   :  { %3677 = vmatmul.mubr.msk.bf16.vlgmr.msra.gmra.mrb[60].mxu0 %vm416_vm2, %v1841_v49 }
 0xcc8   :  { %3687 = vmatpush3.bf16.xpose.msra.mxu0 %v2181_v51  ;;  %3688 = vmatprep.mubr.msk.bf16.mxu0 %vm3973_vm1, %v3972_v15  ;;  %v1828_v55 = vpop.permute.xlu1 %1827 }
 0xcc9   :  { %3698 = vmatprep.subr.bf16.mxu0 %v3972_v15  ;;  %v1843_v61 = vpack.c.bf16 %v1828_v55, %v1828_v55 }
 0xccb   :  { %3683 = vmatmul.mubr.msk.bf16.vlgmr.msra.gmra.mrb[56].mxu1 %vm416_vm2, %v1842_v53 }
 0xccc   :  { %3693 = vmatpush3.bf16.xpose.msra.mxu1 %v2227_v56  ;;  %3694 = vmatprep.mubr.msk.bf16.mxu1 %vm3973_vm1, %v3972_v15 }
 0xccd   :  { %3704 = vmatprep.subr.bf16.mxu1 %v3972_v15 }
 0xccf   :  { %3689 = vmatmul.mubr.msk.bf16.vlgmr.msra.gmra.mrb[64].mxu0 %vm416_vm2, %v1843_v61 }
 0xcd0   :  { %3699 = vmatpush3.bf16.msra.mxu0 %v2369_v39  ;;  %3700 = vmatprep.mubr.msk.bf16.mxu0 %vm3973_vm1, %v3972_v15 }
 0xcd1   :  { %3710 = vmatprep.subr.bf16.mxu0 %v3972_v15 }
 0xcd3   :  { %3695 = vmatmul.mubr.msk.bf16.vlgmr.msra.gmra.mrb[60].mxu1 %vm416_vm2, %v1844_v63 }
 0xcd4   :  { %3706 = vmatprep.mubr.msk.bf16.mxu1 %vm3973_vm1, %v3972_v15 }
 0xd1b   :  { %v1941_v0 = vpop.f32.mrb[52].mxu0 }
 0xd1c   :  { %v1942_v1 = vadd.f32 %v1941_v0, %v4195_v58  ;;  %v3654_v2 = vpop.f32.mrb[53].mxu0 }
 0xd1d   :  { %v1944_v3 = vpop.f32.mrb[54].mxu0 }
 0xd1e   :  { %v3655_v54 = vpop.f32.mrb[55].mxu0  ;;  %v2269_v6 = vsel %vm416_vm2, %v1942_v1, -inf }
 0xd1f   :  { %2270 = vmax.xlane.f32.xlu1 %v2269_v6 }
 0xd8e   :  { %v1987_v32 = vpop.f32.mrb[48].mxu1 }
 0xd8f   :  { %v1988_v27 = vadd.f32 %v1987_v32, %v4195_v58  ;;  %v3660_v8 = vpop.f32.mrb[49].mxu1 }
 0xd90   :  { %v1990_v9 = vpop.f32.mrb[50].mxu1 }
 0xd91   :  { %v3661_v10 = vpop.f32.mrb[51].mxu1  ;;  %v2272_v11 = vsel %vm416_vm2, %v1988_v27, -inf }
 0xd92   :  { %v2033_v4 = vpop.f32.mrb[56].mxu0  ;;  %2273 = vmax.xlane.f32.xlu0 %v2272_v11 }
 0xd93   :  { %v2034_v5 = vadd.f32 %v2033_v4, %v4195_v58  ;;  %v3666_v13 = vpop.f32.mrb[57].mxu0 }
 0xd94   :  { %v2036_v18 = vpop.f32.mrb[58].mxu0 }
 0xd95   :  { %v3667_v20 = vpop.f32.mrb[59].mxu0  ;;  %v2275_v43 = vsel %vm416_vm2, %v2034_v5, -inf }
 0xd96   :  { %2276 = vmax.xlane.f32.xlu0 %v2275_v43  ;;  %v2079_v21 = vpop.f32.mrb[52].mxu1 }
 0xd97   :  { %v2080_v22 = vadd.f32 %v2079_v21, %v4195_v58  ;;  %v3672_v14 = vpop.f32.mrb[53].mxu1 }
 0xd98   :  { %v2082_v17 = vpop.f32.mrb[54].mxu1 }
 0xd99   :  { %v3673_v23 = vpop.f32.mrb[55].mxu1  ;;  %v2278_v25 = vsel %vm416_vm2, %v2080_v22, -inf }
 0xd9a   :  { %v2125_v28 = vpop.f32.mrb[60].mxu0  ;;  %2279 = vmax.xlane.f32.xlu0 %v2278_v25 }
 0xd9b   :  { %v2126_v29 = vadd.f32 %v2125_v28, %v4204_v16  ;;  %v3678_v31 = vpop.f32.mrb[61].mxu0 }
 0xd9c   :  { %v2128_v33 = vpop.f32.mrb[62].mxu0 }
 0xd9d   :  { %v3679_v30 = vpop.f32.mrb[63].mxu0  ;;  %v2281_v24 = vsel %vm416_vm2, %v2126_v29, -inf }
 0xd9e   :  { %2282 = vmax.xlane.f32.xlu1 %v2281_v24  ;;  %v2171_v34 = vpop.f32.mrb[56].mxu1 }
 0xd9f   :  { %v2172_v36 = vadd.f32 %v2171_v34, %v4204_v16  ;;  %v3684_v37 = vpop.f32.mrb[57].mxu1 }
 0xda0   :  { %v2174_v58 = vpop.f32.mrb[58].mxu1 }
 0xda1   :  { %v3685_v40 = vpop.f32.mrb[59].mxu1  ;;  %v2284_v41 = vsel %vm416_vm2, %v2172_v36, -inf }
 0xda2   :  { %v2217_v44 = vpop.f32.mrb[64].mxu0  ;;  %2285 = vmax.xlane.f32.xlu0 %v2284_v41 }
 0xda3   :  { %v2218_v42 = vadd.f32 %v2217_v44, %v4204_v16  ;;  %v3690_v48 = vpop.f32.mrb[65].mxu0 }
 0xda4   :  { %v2220_v49 = vpop.f32.mrb[66].mxu0 }
 0xda5   :  { %v3691_v51 = vpop.f32.mrb[67].mxu0  ;;  %v2287_v52 = vsel %vm416_vm2, %v2218_v42, -inf }
 0xda6   :  { %2288 = vmax.xlane.f32.xlu1 %v2287_v52  ;;  %v2263_v53 = vpop.f32.mrb[60].mxu1 }
 0xda7   :  { %v2264_v55 = vadd.f32 %v2263_v53, %v4204_v16  ;;  %v3696_v56 = vpop.f32.mrb[61].mxu1 }
 0xda8   :  { %v2266_v57 = vpop.f32.mrb[62].mxu1 }
 0xda9   :  { %v3697_v61 = vpop.f32.mrb[63].mxu1  ;;  %v2290_v62 = vsel %vm416_vm2, %v2264_v55, -inf }
 0xdaa   :  { %2291 = vmax.xlane.f32.xlu0 %v2290_v62 }
 0xdac   :  { %v2271_v39 = vpop.xlane.xlu1 %2270 }
 0xdad   :  { %v2293_v63 = vsub.f32 %v1942_v1, %v2271_v39 }
 0xdaf   :  { %v2301_v0 = vmul.f32 1.442695, %v2293_v63 }
 0xdb1   :  { %3925 = vpow2.f32 %v2301_v0 }
 0xdb7   :  { %1875 = vrot.lane.b32.xlu1 %v4514_v50, %s3974_s17 }
 0xdbb   :  { %v4554_v2 = vpop.eup %3925 }
 0xdbc   :  { %v2317_v3 = vsel %vm416_vm2, %v4554_v2, 0.0 }
 0xddb   :  { %2318 = vadd.xlane.f32.xlu1 %v2317_v3 }
 0xe1f   :  { %v2274_v16 = vpop.xlane.xlu0 %2273 }
 0xe20   :  { %v2294_v54 = vsub.f32 %v1988_v27, %v2274_v16 }
 0xe22   :  { %v2303_v6 = vmul.f32 1.442695, %v2294_v54 }
 0xe23   :  { %v2277_v32 = vpop.xlane.xlu0 %2276 }
 0xe24   :  { %3927 = vpow2.f32 %v2303_v6  ;;  %v2295_v8 = vsub.f32 %v2034_v5, %v2277_v32 }
 0xe26   :  { %v2305_v9 = vmul.f32 1.442695, %v2295_v8 }
 0xe27   :  { %v2280_v10 = vpop.xlane.xlu0 %2279 }
 0xe28   :  { %3929 = vpow2.f32 %v2305_v9  ;;  %v2296_v11 = vsub.f32 %v2080_v22, %v2280_v10 }
 0xe2a   :  { %v2307_v4 = vmul.f32 1.442695, %v2296_v11 }
 0xe2b   :  { %v2283_v1 = vpop.xlane.xlu1 %2282 }
 0xe2c   :  { %3931 = vpow2.f32 %v2307_v4  ;;  %v2297_v13 = vsub.f32 %v2126_v29, %v2283_v1 }
 0xe2e   :  { %v3928_v18 = vpop.eup %3927  ;;  %v2309_v20 = vmul.f32 1.442695, %v2297_v13 }
 0xe2f   :  { %v2286_v43 = vpop.xlane.xlu0 %2285  ;;  %v2320_v21 = vsel %vm416_vm2, %v3928_v18, 0.0 }
 0xe30   :  { %3933 = vpow2.f32 %v2309_v20  ;;  %v2298_v14 = vsub.f32 %v2172_v36, %v2286_v43  ;;  %2321 = vadd.xlane.f32.xlu0 %v2320_v21 }
 0xe32   :  { %v4559_v27 = vpop.eup %3929  ;;  %v2311_v17 = vmul.f32 1.442695, %v2298_v14 }
 0xe33   :  { %v2289_v5 = vpop.xlane.xlu1 %2288  ;;  %v2323_v23 = vsel %vm416_vm2, %v4559_v27, 0.0 }
 0xe34   :  { %3935 = vpow2.f32 %v2311_v17  ;;  %v2299_v22 = vsub.f32 %v2218_v42, %v2289_v5  ;;  %2324 = vadd.xlane.f32.xlu1 %v2323_v23 }
 0xe36   :  { %v3932_v25 = vpop.eup %3931  ;;  %v2313_v28 = vmul.f32 1.442695, %v2299_v22 }
 0xe37   :  { %v1876_v29 = vpop.permute.xlu1 %1875  ;;  %v2292_v31 = vpop.xlane.xlu0 %2291  ;;  %v2326_v33 = vsel %vm416_vm2, %v3932_v25, 0.0 }
 0xe38   :  { %3937 = vpow2.f32 %v2313_v28  ;;  %v1894_v30 = vpack.c.bf16 %v1876_v29, %v1876_v29  ;;  %v2300_v24 = vsub.f32 %v2264_v55, %v2292_v31  ;;  %2327 = vadd.xlane.f32.xlu0 %v2326_v33  ;;  %v1897_v28 = vpack.c.bf16 %v4482_v12, %v4482_v12 }
 0xe3a   :  { %v4564_v34 = vpop.eup %3933  ;;  %v2415_v36 = vsel %vm884_vm3, %v1894_v30, 0  ;;  %v2315_v37 = vmul.f32 1.442695, %v2300_v24  ;;  %v2553_v33 = vsel %vm884_vm3, %v1897_v28, 0 }
 0xe3b   :  { %3705 = vmatpush3.bf16.msra.mxu1 %v2415_v36  ;;  %v2329_v58 = vsel %vm416_vm2, %v4564_v34, 0.0 }
 0xe3c   :  { %3939 = vpow2.f32 %v2315_v37  ;;  %2330 = vadd.xlane.f32.xlu1 %v2329_v58  ;;  %3716 = vmatprep.subr.bf16.mxu1 %v3972_v15 }
 0xe3e   :  { %v3936_v40 = vpop.eup %3935 }
 0xe3f   :  { %v2332_v41 = vsel %vm416_vm2, %v3936_v40, 0.0 }
 0xe40   :  { %2333 = vadd.xlane.f32.xlu0 %v2332_v41 }
 0xe42   :  { %v4571_v44 = vpop.eup %3937 }
 0xe43   :  { %v2335_v42 = vsel %vm416_vm2, %v4571_v44, 0.0 }
 0xe44   :  { %2336 = vadd.xlane.f32.xlu0 %v2335_v42 }
 0xe46   :  { %v4575_v48 = vpop.eup %3939 }
 0xe47   :  { %v2338_v49 = vsel %vm416_vm2, %v4575_v48, 0.0 }
 0xe48   :  { %2339 = vadd.xlane.f32.xlu0 %v2338_v49 }
 0xe4d   :  { %1887 = vrot.lane.b32.xlu1 %v4514_v50, %s3976_s19 }
 0xe51   :  { %1877 = vrot.lane.b32.xlu1 %v4482_v12, %s3974_s17 }
 0xe55   :  { %1883 = vrot.lane.b32.xlu1 %v4482_v12, %s3975_s18 }
 0xe59   :  { %1889 = vrot.lane.b32.xlu1 %v4482_v12, %s3976_s19 }
 0xe5e   :  { %1881 = vrot.lane.b32.xlu0 %v4514_v50, %s3975_s18 }
 0xe68   :  { %v2319_v51 = vpop.xlane.xlu1 %2318 }
 0xe69   :  { %3941 = vrcp.f32 %v2319_v51 }
 0xe73   :  { %v3942_v52 = vpop.eup %3941 }
 0xe74   :  { %v2349_v53 = vmul.f32 %v3942_v52, %v4554_v2 }
 0xe76   :  { %v2357_v55 = vpack.c.bf16 %v2349_v53, %v2349_v53 }
 0xe78   :  { %3701 = vmatmul.mubr.msk.bf16.vlgmr.msra.gmra.mrb[68].mxu0 %vm416_vm2, %v2357_v55 }
 0xe79   :  { %3712 = vmatprep.mubr.msk.bf16.mxu0 %vm3973_vm1, %v3972_v15 }
 0xebd   :  { %v2322_v56 = vpop.xlane.xlu0 %2321 }
 0xebe   :  { %3943 = vrcp.f32 %v2322_v56 }
 0xec1   :  { %v2325_v57 = vpop.xlane.xlu1 %2324 }
 0xec5   :  { %v2328_v61 = vpop.xlane.xlu0 %2327 }
 0xec6   :  { %3945 = vrcp.f32 %v2328_v61 }
 0xec7   :  { %3947 = vrcp.f32 %v2325_v57 }
 0xec8   :  { %v3944_v62 = vpop.eup %3943 }
 0xec9   :  { %v2350_v39 = vmul.f32 %v3944_v62, %v3928_v18  ;;  %v2331_v63 = vpop.xlane.xlu1 %2330 }
 0xecb   :  { %v2358_v50 = vpack.c.bf16 %v2350_v39, %v2350_v39  ;;  %v3861_v39 = vld [vmem:[%s4765_s3 + $0x70] sm:$0xff]  }
 0xecd   :  { %v1888_v0 = vpop.permute.xlu1 %1887  ;;  %3707 = vmatmul.mubr.msk.bf16.vlgmr.msra.gmra.mrb[64].mxu1 %vm416_vm2, %v2358_v50  ;;  %v2334_v2 = vpop.xlane.xlu0 %2333 }
 0xece   :  { %v1896_v3 = vpack.c.bf16 %v1888_v0, %v1888_v0  ;;  %3949 = vrcp.f32 %v2334_v2  ;;  %3718 = vmatprep.mubr.msk.bf16.mxu1 %vm3973_vm1, %v3972_v15 }
 0xecf   :  { %3951 = vrcp.f32 %v2331_v63 }
 0xed0   :  { %v3946_v16 = vpop.eup %3945  ;;  %v2507_v54 = vsel %vm884_vm3, %v1896_v3, 0 }
 0xed1   :  { %v2352_v6 = vmul.f32 %v3946_v16, %v3932_v25  ;;  %v1878_v32 = vpop.permute.xlu1 %1877  ;;  %3717 = vmatpush3.bf16.msra.mxu1 %v2507_v54  ;;  %v2337_v8 = vpop.xlane.xlu0 %2336 }
 0xed2   :  { %v1898_v9 = vpack.c.bf16 %v1878_v32, %v1878_v32  ;;  %3728 = vmatprep.subr.bf16.mxu1 %v3972_v15  ;;  %v3948_v13 = vpop.eup %3947 }
 0xed3   :  { %v2360_v10 = vpack.c.bf16 %v2352_v6, %v2352_v6  ;;  %v2351_v14 = vmul.f32 %v3948_v13, %v4559_v27 }
 0xed4   :  { %v2599_v11 = vsel %vm884_vm3, %v1898_v9, 0 }
 0xed5   :  { %v1884_v4 = vpop.permute.xlu1 %1883  ;;  %3719 = vmatmul.mubr.msk.bf16.vlgmr.msra.gmra.mrb[68].mxu1 %vm416_vm2, %v2360_v10  ;;  %v2340_v1 = vpop.xlane.xlu0 %2339  ;;  %v2359_v29 = vpack.c.bf16 %v2351_v14, %v2351_v14 }
 0xed6   :  { %3729 = vmatpush3.bf16.msra.mxu1 %v2599_v11  ;;  %3953 = vrcp.f32 %v2340_v1  ;;  %3730 = vmatprep.mubr.msk.bf16.mxu1 %vm3973_vm1, %v3972_v15  ;;  %v1899_v36 = vpack.c.bf16 %v1884_v4, %v1884_v4 }
 0xed7   :  { %3740 = vmatprep.subr.bf16.mxu1 %v3972_v15  ;;  %3955 = vrcp.f32 %v2337_v8 }
 0xed8   :  { %v3950_v18 = vpop.eup %3949 }
 0xed9   :  { %v2354_v20 = vmul.f32 %v3950_v18, %v3936_v40  ;;  %v1890_v43 = vpop.permute.xlu1 %1889  ;;  %v1882_v21 = vpop.permute.xlu0 %1881  ;;  %v2645_v40 = vsel %vm884_vm3, %v1899_v36, 0  ;;  %v3862_v18 = vld [vmem:[%s4765_s3 + $0x78] sm:$0xff]  }
 0xeda   :  { %v1900_v17 = vpack.c.bf16 %v1890_v43, %v1890_v43  ;;  %v1895_v5 = vpack.c.bf16 %v1882_v21, %v1882_v21  ;;  %v3952_v31 = vpop.eup %3951 }
 0xedb   :  { %v2362_v23 = vpack.c.bf16 %v2354_v20, %v2354_v20  ;;  %v2353_v30 = vmul.f32 %v3952_v31, %v4564_v34 }
 0xedc   :  { %v2691_v22 = vsel %vm884_vm3, %v1900_v17, 0  ;;  %v2461_v25 = vsel %vm884_vm3, %v1895_v5, 0 }
 0xedd   :  { %3711 = vmatpush3.bf16.msra.mxu0 %v2461_v25  ;;  %3731 = vmatmul.mubr.msk.bf16.vlgmr.msra.gmra.mrb[72].mxu1 %vm416_vm2, %v2362_v23  ;;  %v2361_v37 = vpack.c.bf16 %v2353_v30, %v2353_v30 }
 0xede   :  { %3741 = vmatpush3.bf16.msra.mxu1 %v2691_v22  ;;  %3722 = vmatprep.subr.bf16.mxu0 %v3972_v15 }
 0xedf   :  { %3742 = vmatprep.mubr.msk.bf16.mxu1 %vm3973_vm1, %v3972_v15  ;;  %3754 = vmatprep.subr.bf16.mxu1 %v3972_v15 }
 0xee0   :  { %v3954_v27 = vpop.eup %3953  ;;  %3713 = vmatmul.mubr.msk.bf16.vlgmr.msra.gmra.mrb[72].mxu0 %vm416_vm2, %v2359_v29 }
 0xee1   :  { %v2356_v12 = vmul.f32 %v3954_v27, %v4575_v48  ;;  %3723 = vmatpush3.bf16.msra.mxu0 %v2553_v33  ;;  %3724 = vmatprep.mubr.msk.bf16.mxu0 %vm3973_vm1, %v3972_v15  ;;  %v3956_v58 = vpop.eup %3955 }
 0xee2   :  { %3734 = vmatprep.subr.bf16.mxu0 %v3972_v15  ;;  %v2355_v34 = vmul.f32 %v3956_v58, %v4571_v44 }
 0xee3   :  { %v2364_v24 = vpack.c.bf16 %v2356_v12, %v2356_v12 }
 0xee4   :  { %v2363_v41 = vpack.c.bf16 %v2355_v34, %v2355_v34 }
 0xee5   :  { %3743 = vmatmul.mubr.msk.bf16.vlgmr.msra.gmra.mrb[76].mxu1 %vm416_vm2, %v2364_v24 }
 0xee6   :  { %3758 = vmatprep.mubr.msk.bf16.mxu1 %vm3973_vm1, %v3972_v15 }
 0xee8   :  { %3725 = vmatmul.mubr.msk.bf16.vlgmr.msra.gmra.mrb[76].mxu0 %vm416_vm2, %v2361_v37 }
 0xee9   :  { %3735 = vmatpush3.bf16.msra.mxu0 %v2645_v40  ;;  %3736 = vmatprep.mubr.msk.bf16.mxu0 %vm3973_vm1, %v3972_v15 }
 0xeea   :  { %3746 = vmatprep.subr.bf16.mxu0 %v3972_v15 }
 0xef0   :  { %3737 = vmatmul.mubr.msk.bf16.vlgmr.msra.gmra.mrb[80].mxu0 %vm416_vm2, %v2363_v41 }
 0xef1   :  { %3750 = vmatprep.mubr.msk.bf16.mxu0 %vm3973_vm1, %v3972_v15  ;;  %3747 = vmatpush3.bf16.msra.mxu0 %v3861_v39 }
 0xef2   :  { %3748 = vmatprep.subr.bf16.mxu0 %v3972_v15 }
 0xef5   :  { %3749 = vmatpush3.bf16.msra.mxu0 %v3862_v18 }
 0xef6   :  { %3762 = vmatprep.subr.bf16.mxu0 %v3972_v15 }
 0xf4b   :  { %v2405_v42 = vpop.f32.mrb[68].mxu0 }
 0xf4c   :  { %v3702_v48 = vpop.f32.mrb[69].mxu0 }
 0xf4d   :  { %v2408_v49 = vpop.f32.mrb[70].mxu0 }
 0xf4e   :  { %v3703_v51 = vpop.f32.mrb[71].mxu0 }
 0xfa0   :  { %v2451_v52 = vpop.f32.mrb[64].mxu1 }
 0xfa1   :  { %v3708_v53 = vpop.f32.mrb[65].mxu1 }
 0xfa2   :  { %v2454_v55 = vpop.f32.mrb[66].mxu1 }
 0xfa3   :  { %v3709_v56 = vpop.f32.mrb[67].mxu1 }
 0xfa8   :  { %v2543_v57 = vpop.f32.mrb[68].mxu1 }
 0xfa9   :  { %v3720_v61 = vpop.f32.mrb[69].mxu1 }
 0xfaa   :  { %v2546_v62 = vpop.f32.mrb[70].mxu1 }
 0xfab   :  { %v3721_v44 = vpop.f32.mrb[71].mxu1 }
 0xfb0   :  { %v2635_v63 = vpop.f32.mrb[72].mxu1 }
 0xfb1   :  { %v3822_v50 = vpack.i.bf16 %v2635_v63, %v2451_v52  ;;  %v3732_v0 = vpop.f32.mrb[73].mxu1 }
 0xfb2   :  { %v2638_v2 = vpop.f32.mrb[74].mxu1 }
 0xfb3   :  { %v2497_v3 = vpop.f32.mrb[72].mxu0  ;;  %3823 = vrot.lane.b32.xlu1 %v3822_v50, %s3978_s24  ;;  %v3733_v16 = vpop.f32.mrb[75].mxu1 }
 0xfb4   :  { %v3714_v54 = vpop.f32.mrb[73].mxu0 }
 0xfb5   :  { %v2500_v6 = vpop.f32.mrb[74].mxu0  ;;  %v3864_v54 = vld [vmem:[%s4769_s4 + $0x18] sm:$0xff]  }
 0xfb6   :  { %v3715_v32 = vpop.f32.mrb[75].mxu0 }
 0xfb8   :  { %v2727_v8 = vpop.f32.mrb[76].mxu1 }
 0xfb9   :  { %v3832_v9 = vpack.i.bf16 %v2727_v8, %v2543_v57  ;;  %v3744_v10 = vpop.f32.mrb[77].mxu1 }
 0xfba   :  { %v2730_v11 = vpop.f32.mrb[78].mxu1 }
 0xfbb   :  { %v2589_v4 = vpop.f32.mrb[76].mxu0  ;;  %3833 = vrot.lane.b32.xlu1 %v3832_v9, %s3980_s26  ;;  %v3745_v1 = vpop.f32.mrb[79].mxu1 }
 0xfbc   :  { %v3726_v13 = vpop.f32.mrb[77].mxu0  ;;  %v2855_v1 = vrot.slane %v4468_v59, %v1373_v7  ;;  %v3865_v7 = vld [vmem:[%s4770_s5 + $0x40] sm:$0xff]  }
 0xfbd   :  { %v2592_v20 = vpop.f32.mrb[78].mxu0 }
 0xfbe   :  { %v3727_v43 = vpop.f32.mrb[79].mxu0 }
 0xfc3   :  { %v2681_v21 = vpop.f32.mrb[80].mxu0 }
 0xfc4   :  { %v3827_v14 = vpack.i.bf16 %v2681_v21, %v2497_v3  ;;  %v3738_v17 = vpop.f32.mrb[81].mxu0  ;;  %v2861_v21 = vrot.slane %v4468_v59, %v1379_v60  ;;  %v3866_v60 = vld [vmem:[%s4770_s5 + $0x48] sm:$0xff]  }
 0xfc5   :  { %v2684_v5 = vpop.f32.mrb[82].mxu0 }
 0xfc6   :  { %3828 = vrot.lane.b32.xlu0 %v3827_v14, %s3979_s25  ;;  %v3739_v23 = vpop.f32.mrb[83].mxu0 }
0x1025   :  { %v3824_v22 = vpop.permute.xlu1 %3823 }
0x1026   :  { %v3826_v25 = vunpack.i.h.bf16 %v3824_v22  ;;  %v3825_v28 = vunpack.i.l.bf16 %v3824_v22  ;;  %v3867_v22 = vld [vmem:[%s4770_s5 + $0x50] sm:$0xff]  }
0x1028   :  { %v2758_v12 = vsel %vm416_vm2, %v2589_v4, %v3826_v25  ;;  %v2757_v30 = vsel %vm416_vm2, %v2405_v42, %v3825_v28  ;;  %v2767_v42 = vrot.slane %v4468_v59, %v1285_v35  ;;  %v3868_v25 = vld [vmem:[%s4770_s5 + $0x58] sm:$0xff]   ;;  %v3869_v28 = vld [vmem:[%s4770_s5 + $0x60] sm:$0xff]  }
0x102d   :  { %v3834_v29 = vpop.permute.xlu1 %3833 }
0x102e   :  { %v3836_v24 = vunpack.i.h.bf16 %v3834_v29  ;;  %v3835_v36 = vunpack.i.l.bf16 %v3834_v29  ;;  %v3870_v29 = vld [vmem:[%s4770_s5 + $0x68] sm:$0xff]  }
0x1038   :  { %v3829_v31 = vpop.permute.xlu0 %3828 }
0x1039   :  { %v3831_v27 = vunpack.i.h.bf16 %v3829_v31  ;;  %v3830_v33 = vunpack.i.l.bf16 %v3829_v31  ;;  %v3871_v31 = vld [vmem:[%s4770_s5 + $0x70] sm:$0xff]  }
0x103b   :  { %v2759_v37 = vsel %vm1276_vm4, %v2757_v30, %v3830_v33  ;;  %v2760_v58 = vsel %vm1276_vm4, %v2758_v12, %v3831_v27  ;;  %v3872_v27 = vld [vmem:[%s4770_s5 + $0x78] sm:$0xff]   ;;  %v3332_v33 = vld [vmem:[%s4771_s7 + $0x1] ss:$0 sm:$0xff] }
0x103c   :  { %v2761_v40 = vsel %vm1279_vm5, %v2759_v37, %v3835_v36  ;;  %v2762_v34 = vsel %vm1279_vm5, %v2760_v58, %v3836_v24 }
0x103d   :  { %v2763_v41 = vpack.c.bf16 %v2762_v34, %v2761_v40 }
0x103f   :  { %3751 = vmatmul.mubr.msk.bf16.vlgmr.msra.gmra.mrb[84].mxu0 %vm78_vm0, %v2763_v41 }
0x1040   :  { %3778 = vmatprep.mubr.msk.bf16.mxu0 %vm3973_vm1, %v3972_v15  ;;  %3763 = vmatpush3.bf16.msra.mxu0 %v3865_v7 }
0x1041   :  { %3764 = vmatprep.subr.bf16.mxu0 %v3972_v15 }
0x1044   :  { %3765 = vmatpush3.bf16.msra.mxu0 %v3866_v60 }
0x1045   :  { %3766 = vmatprep.subr.bf16.mxu0 %v3972_v15 }
0x1048   :  { %3767 = vmatpush3.bf16.msra.mxu0 %v3867_v22 }
0x1049   :  { %3768 = vmatprep.subr.bf16.mxu0 %v3972_v15 }
0x104c   :  { %3769 = vmatpush3.bf16.msra.mxu0 %v3868_v25 }
0x104d   :  { %3770 = vmatprep.subr.bf16.mxu0 %v3972_v15 }
0x1050   :  { %3771 = vmatpush3.bf16.msra.mxu0 %v3869_v28  ;;  %v3970_v28 = vld [vmem:[%s4767_s6 + $0x10] sm:$0xff] }
0x1051   :  { %3772 = vmatprep.subr.bf16.mxu0 %v3972_v15 }
0x1054   :  { %3773 = vmatpush3.bf16.msra.mxu0 %v3870_v29  ;;  %v3070_v29 = vrot.slane %v3970_v28, %v1588_v19  ;;  %v3876_v19 = vld [vmem:[%s4773_s9 + $0x8] sm:$0xff]  }
0x1055   :  { %3774 = vmatprep.subr.bf16.mxu0 %v3972_v15 }
0x1058   :  { %3775 = vmatpush3.bf16.msra.mxu0 %v3871_v31 }
0x1059   :  { %3776 = vmatprep.subr.bf16.mxu0 %v3972_v15 }
0x105c   :  { %3777 = vmatpush3.bf16.msra.mxu0 %v3872_v27 }
0x1112   :  { %v2817_v48 = vpop.f32.mrb[84].mxu0 }
0x1113   :  { %v2818_v49 = vadd.f32 %v2817_v48, %v2767_v42  ;;  %v3752_v51 = vpop.f32.mrb[85].mxu0 }
0x1114   :  { %v2820_v52 = vpop.f32.mrb[86].mxu0 }
0x1115   :  { %v2821_v53 = vadd.f32 %v2820_v52, %v2767_v42  ;;  %v3753_v55 = vpop.f32.mrb[87].mxu0  ;;  %v2824_v56 = vadd.f32 %v2818_v49, %v4434_v46 }
0x1117   :  { %v2826_v57 = vsel %vm78_vm0, %v2824_v56, 0.0  ;;  %v2825_v61 = vadd.f32 %v2821_v53, %v4436_v47  ;;  %v3863_v47 = vld [vmem:[%s4769_s4 + $0x10] sm:$0xff]  }
0x1118   :  { %2827 = vadd.xlane.f32.xlu0 %v2826_v57  ;;  %3755 = vmatpush3.bf16.msra.mxu1 %v3863_v47 }
0x1119   :  { %v2829_v62 = vsel %vm78_vm0, %v2825_v61, 0.0  ;;  %3756 = vmatprep.subr.bf16.mxu1 %v3972_v15 }
0x111a   :  { %2830 = vadd.xlane.f32.xlu1 %v2829_v62 }
0x111c   :  { %3757 = vmatpush3.bf16.msra.mxu1 %v3864_v54 }
0x111d   :  { %3782 = vmatprep.subr.bf16.mxu1 %v3972_v15 }
0x11a5   :  { %v2828_v44 = vpop.xlane.xlu0 %2827 }
0x11a6   :  { %v2832_v39 = vmul.f32 0.03125, %v2828_v44 }
0x11a7   :  { %v2831_v63 = vpop.xlane.xlu1 %2830 }
0x11a8   :  { %v2834_v35 = vsub.f32 %v2824_v56, %v2832_v39  ;;  %v2833_v50 = vmul.f32 0.03125, %v2831_v63 }
0x11aa   :  { %v2835_v0 = vsub.f32 %v2825_v61, %v2833_v50  ;;  %v2836_v2 = vmul.f32 %v2834_v35, %v2834_v35 }
0x11ac   :  { %v2838_v3 = vsel %vm78_vm0, %v2836_v2, 0.0  ;;  %v2837_v16 = vmul.f32 %v2835_v0, %v2835_v0 }
0x11ad   :  { %2839 = vadd.xlane.f32.xlu0 %v2838_v3 }
0x11ae   :  { %v2841_v46 = vsel %vm78_vm0, %v2837_v16, 0.0 }
0x11b1   :  { %2842 = vadd.xlane.f32.xlu0 %v2841_v46 }
0x123a   :  { %v2840_v6 = vpop.xlane.xlu0 %2839 }
0x123b   :  { %v2844_v32 = vmul.f32 0.03125, %v2840_v6 }
0x123d   :  { %v2846_v8 = vadd.f32 1e-12, %v2844_v32 }
0x123e   :  { %v2843_v9 = vpop.xlane.xlu0 %2842 }
0x123f   :  { %3957 = vrsqrt.f32 %v2846_v8  ;;  %v2845_v10 = vmul.f32 0.03125, %v2843_v9 }
0x1241   :  { %v2847_v11 = vadd.f32 1e-12, %v2845_v10 }
0x1243   :  { %3959 = vrsqrt.f32 %v2847_v11 }
0x1249   :  { %v3958_v4 = vpop.eup %3957 }
0x124a   :  { %v2850_v13 = vmul.f32 %v3958_v4, %v2834_v35 }
0x124c   :  { %v2856_v20 = vmul.f32 %v2855_v1, %v2850_v13 }
0x124d   :  { %v3960_v18 = vpop.eup %3959 }
0x124e   :  { %v2851_v43 = vmul.f32 %v3960_v18, %v2835_v0  ;;  %v4675_v17 = vadd.f32 %v2861_v21, %v2856_v20  ;;  %v2949_v0 = vrot.slane %v4468_v59, %v1467_v38 }
0x1250   :  { %v2857_v14 = vmul.f32 %v2855_v1, %v2851_v43 }
0x1252   :  { %v4677_v5 = vadd.f32 %v2861_v21, %v2857_v14  ;;  %v3873_v21 = vld [vmem:[%s4772_s8] sm:$0xff]   ;;  %v3874_v14 = vld [vmem:[%s4772_s8 + $0x8] sm:$0xff]  }
0x1254   :  { %v2864_v23 = vpack.c.bf16 %v4677_v5, %v4675_v17 }
0x1256   :  { %3759 = vmatmul.mubr.msk.bf16.vlgmr.msra.gmra.mrb[80].mxu1 %vm78_vm0, %v2864_v23 }
0x1257   :  { %3786 = vmatprep.mubr.msk.bf16.mxu1 %vm3973_vm1, %v3972_v15  ;;  %3783 = vmatpush3.bf16.msra.mxu1 %v3873_v21 }
0x1258   :  { %3784 = vmatprep.subr.bf16.mxu1 %v3972_v15 }
0x125b   :  { %3785 = vmatpush3.bf16.msra.mxu1 %v3874_v14 }
0x125c   :  { %3790 = vmatprep.subr.bf16.mxu1 %v3972_v15 }
0x1329   :  { %v2920_v12 = vpop.f32.mrb[80].mxu1 }
0x132a   :  { %v2921_v30 = vadd.f32 %v3332_v33, %v2920_v12  ;;  %v3760_v24 = vpop.f32.mrb[81].mxu1 }
0x132b   :  { %v2923_v36 = vpop.f32.mrb[82].mxu1  ;;  %v3344_v24 = vld [vmem:[%s4767_s6 + $0x18] ss:$0 sm:$0xff] }
0x132c   :  { %v2929_v37 = vmul.f32 0.044715, %v2921_v30  ;;  %v2924_v58 = vadd.f32 %v3332_v33, %v2923_v36  ;;  %v3761_v40 = vpop.f32.mrb[83].mxu1  ;;  %v2927_v62 = vmul.f32 0.5, %v2921_v30 }
0x132e   :  { %v2931_v34 = vmul.f32 %v2929_v37, %v2921_v30  ;;  %v2930_v41 = vmul.f32 0.044715, %v2924_v58  ;;  %v2928_v44 = vmul.f32 0.5, %v2924_v58 }
0x1330   :  { %v2933_v42 = vmul.f32 %v2931_v34, %v2921_v30  ;;  %v2932_v48 = vmul.f32 %v2930_v41, %v2924_v58 }
0x1332   :  { %v2935_v49 = vadd.f32 %v2933_v42, %v2921_v30  ;;  %v2934_v51 = vmul.f32 %v2932_v48, %v2924_v58  ;;  %v3971_v42 = vld [vmem:[%s4766_s2] sm:$0x7] }
0x1333   :  { %v3095_v48 = vrot.slane %v3971_v42, %v4117_v45 }
0x1334   :  { %v2937_v52 = vmul.f32 0.7978846, %v2935_v49  ;;  %v2936_v53 = vadd.f32 %v2934_v51, %v2924_v58 }
0x1336   :  { %3961 = vtanh.f32 %v2937_v52  ;;  %v2938_v55 = vmul.f32 0.7978846, %v2936_v53 }
0x1338   :  { %3963 = vtanh.f32 %v2938_v55 }
0x1340   :  { %v3962_v56 = vpop.eup %3961 }
0x1341   :  { %v2941_v57 = vadd.f32 1.0, %v3962_v56 }
0x1342   :  { %v3964_v61 = vpop.eup %3963 }
0x1343   :  { %v2942_v39 = vadd.f32 1.0, %v3964_v61  ;;  %v2943_v63 = vmul.f32 %v2941_v57, %v2927_v62 }
0x1345   :  { %v2944_v35 = vmul.f32 %v2942_v39, %v2928_v44 }
0x1347   :  { %v2945_v50 = vpack.c.bf16 %v2944_v35, %v2943_v63 }
0x1349   :  { %3779 = vmatmul.mubr.bf16.vlgmr.msra.gmra.mrb[88].mxu0 %v2945_v50 }
0x141c   :  { %v3032_v2 = vpop.f32.mrb[88].mxu0 }
0x141d   :  { %v3033_v3 = vadd.f32 %v3032_v2, %v2949_v0  ;;  %v3780_v16 = vpop.f32.mrb[89].mxu0 }
0x141e   :  { %v3035_v46 = vpop.f32.mrb[90].mxu0 }
0x141f   :  { %v3036_v47 = vadd.f32 %v3035_v46, %v2949_v0  ;;  %v3781_v54 = vpop.f32.mrb[91].mxu0  ;;  %v3039_v6 = vadd.f32 %v3033_v3, %v4675_v17 }
0x1421   :  { %v3041_v32 = vsel %vm78_vm0, %v3039_v6, 0.0  ;;  %v3040_v8 = vadd.f32 %v3036_v47, %v4677_v5 }
0x1422   :  { %3042 = vadd.xlane.f32.xlu1 %v3041_v32 }
0x1423   :  { %v3044_v9 = vsel %vm78_vm0, %v3040_v8, 0.0 }
0x1424   :  { %3045 = vadd.xlane.f32.xlu0 %v3044_v9 }
0x14af   :  { %v3043_v10 = vpop.xlane.xlu1 %3042 }
0x14b0   :  { %v3047_v11 = vmul.f32 0.03125, %v3043_v10 }
0x14b1   :  { %v3046_v4 = vpop.xlane.xlu0 %3045 }
0x14b2   :  { %v3049_v38 = vsub.f32 %v3039_v6, %v3047_v11  ;;  %v3048_v59 = vmul.f32 0.03125, %v3046_v4 }
0x14b4   :  { %v3050_v1 = vsub.f32 %v3040_v8, %v3048_v59  ;;  %v3051_v13 = vmul.f32 %v3049_v38, %v3049_v38 }
0x14b6   :  { %v3053_v18 = vsel %vm78_vm0, %v3051_v13, 0.0  ;;  %v3052_v20 = vmul.f32 %v3050_v1, %v3050_v1 }
0x14b7   :  { %3054 = vadd.xlane.f32.xlu1 %v3053_v18 }
0x14b8   :  { %v3056_v43 = vsel %vm78_vm0, %v3052_v20, 0.0 }
0x14b9   :  { %3057 = vadd.xlane.f32.xlu0 %v3056_v43 }
0x1544   :  { %v3055_v17 = vpop.xlane.xlu1 %3054 }
0x1545   :  { %v3059_v5 = vmul.f32 0.03125, %v3055_v17 }
0x1546   :  { %v3058_v23 = vpop.xlane.xlu0 %3057 }
0x1547   :  { %v3061_v7 = vadd.f32 1e-12, %v3059_v5  ;;  %v3060_v60 = vmul.f32 0.03125, %v3058_v23 }
0x1549   :  { %3965 = vrsqrt.f32 %v3061_v7  ;;  %v3062_v22 = vadd.f32 1e-12, %v3060_v60 }
0x154b   :  { %3967 = vrsqrt.f32 %v3062_v22 }
0x1553   :  { %v3966_v25 = vpop.eup %3965 }
0x1554   :  { %v3065_v31 = vmul.f32 %v3966_v25, %v3049_v38 }
0x1555   :  { %v3968_v27 = vpop.eup %3967 }
0x1556   :  { %v3066_v33 = vmul.f32 %v3968_v27, %v3050_v1  ;;  %v3071_v12 = vmul.f32 %v3070_v29, %v3065_v31 }
0x1558   :  { %v3072_v30 = vmul.f32 %v3070_v29, %v3066_v33  ;;  %v3077_v37 = vadd.f32 %v3344_v24, %v3071_v12 }
0x155a   :  { %v3078_v36 = vadd.f32 %v3344_v24, %v3072_v30 }
0x155c   :  { %v3081_v58 = vrot.slane %v3078_v36, 7 }
0x155e   :  { %v3083_v40 = vsel %vm3082_vm6, %v3081_v58, %v3077_v37 }
0x155f   :  { %v3086_v34 = vsel %vm3085_vm7, %v3083_v40, 0.0 }
0x1560   :  { %v3087_v41 = vpack.c.bf16 %v3086_v34, %v3086_v34 }
0x1562   :  { %3787 = vmatmul.mubr.msk.bf16.vlgmr.msra.gmra.mrb[84].mxu1 %vm78_vm0, %v3087_v41 }
0x1563   :  { %3794 = vmatprep.mubr.msk.bf16.mxu1 %vm3973_vm1, %v3972_v15  ;;  %3791 = vmatpush3.bf16.msra.mxu1 %v3875_v26 }
0x1564   :  { %3792 = vmatprep.subr.bf16.mxu1 %v3972_v15  ;;  %v3348_v15 = vld [vmem:[%s4774_s10] ss:$0 sm:$0xff] }
0x1567   :  { %3793 = vmatpush3.bf16.msra.mxu1 %v3876_v19 }
0x1635   :  { %v3145_v49 = vpop.f32.mrb[84].mxu1 }
0x1636   :  { %v3146_v51 = vadd.f32 %v3145_v49, %v3095_v48  ;;  %v3788_v52 = vpop.f32.mrb[85].mxu1 }
0x1637   :  { %v3148_v53 = vpop.f32.mrb[86].mxu1 }
0x1638   :  { %v3151_v55 = vmax.f32 %v3146_v51, 0.0  ;;  %v3789_v56 = vpop.f32.mrb[87].mxu1 }
0x163a   :  { %v3152_v57 = vpack.c.bf16 %v3151_v55, %v3151_v55 }
0x163c   :  { %3795 = vmatmul.mubr.msk.bf16.vlgmr.msra.gmra.mrb[88].mxu1 %vm78_vm0, %v3152_v57 }
0x170f   :  { %v3213_v61 = vpop.f32.mrb[88].mxu1 }
0x1710   :  { %v3214_v62 = vadd.f32 %v3348_v15, %v3213_v61  ;;  %v3796_v44 = vpop.f32.mrb[89].mxu1 }
0x1711   :  { %v3216_v39 = vpop.f32.mrb[90].mxu1 }
0x1712   :  { %3219 = vst [vmem:[%s4775_s11] sm:$0xff] %v3214_v62  ;;  %v3797_v45 = vpop.f32.mrb[91].mxu1 }

</bundles_post_ra>
